<compile_context>
chip_gen: v5e
topology: v5e:2x2
jax: 0.10.0
libtpu: 0.0.40
codegen_flags: <defaults>
</compile_context>

<pallas_src>
import jax
import jax.numpy as jnp
from jax.experimental import pallas as pl
from jax.experimental.pallas import tpu as pltpu

LAYER_DIM = 256          # self.layed_dim in the PyTorch module
MAX_BATCH_TILE = 512     # rows per batch tile


def _round_up(x, m):
    return (x + m - 1) // m * m


def agent_rollout_kernel(x_ref, h0_ref,
                         w1_ref, b1_ref, w2_ref, b2_ref,
                         wcat_ref, bcat_ref, whh_ref, bhh_ref,
                         q_ref, hfin_ref,
                         h_scr):
    """Grid = (batch_tiles, T).  Time is the inner axis; h carried in VMEM."""
    H = LAYER_DIM
    t = pl.program_id(1)

    # Initialize the hidden-state carry from the HBM h0 at the first timestep
    # of each batch tile.
    @pl.when(t == 0)
    def _():
        h_scr[...] = h0_ref[...]

    h = h_scr[...]                      # f32 [TB, H] carry (VMEM resident)
    x = x_ref[...]                      # bf16 [TB, in_dim]

    def mm(a, w_ref):
        # bf16 operands on the MXU, f32 accumulation.
        return jnp.dot(a.astype(jnp.bfloat16), w_ref[...],
                       preferred_element_type=jnp.float32)

    # fc1 + relu, fc2 + relu
    x1 = jnp.maximum(mm(x, w1_ref) + b1_ref[...], 0.0)
    x2 = jnp.maximum(mm(x1, w2_ref) + b2_ref[...], 0.0)

    # Fused [GRU input-to-hidden | fc3]: gi = cols [0,3H), q = cols [3H, ...)
    gi_q = mm(x2, wcat_ref) + bcat_ref[...]
    gh = mm(h, whh_ref) + bhh_ref[...]

    # GRU gates in f32, (r, z, n) ordering as in torch.nn.GRUCell.
    r = jax.nn.sigmoid(gi_q[:, 0 * H:1 * H] + gh[:, 0 * H:1 * H])
    z = jax.nn.sigmoid(gi_q[:, 1 * H:2 * H] + gh[:, 1 * H:2 * H])
    n = jnp.tanh(gi_q[:, 2 * H:3 * H] + r * gh[:, 2 * H:3 * H])
    h_new = (1.0 - z) * n + z * h
    h_scr[...] = h_new

    # fc3 consumed x2 (exactly as in the PyTorch forward) — computed above.
    out_store = q_ref.shape[-1]
    q_ref[...] = gi_q[:, 3 * H:3 * H + out_store]

    # Final hidden written once per batch tile (output block is resident
    # across the time axis; HBM writeback happens when the tile changes).
    @pl.when(t == pl.num_programs(1) - 1)
    def _():
        hfin_ref[...] = h_new


def agent_rollout(x_seq, h0, kp, out_dim):
    """x_seq: [T, B, in_dim] float, h0: [B, 256] f32 -> (q [T,B,out], h [B,256])."""
    H = LAYER_DIM
    T, B, in_dim = x_seq.shape
    out_store = _round_up(out_dim, 128)          # lane-dense q store

    # Batch tile: >= 2 tiles when B is big enough (keeps both v7x cores busy),
    # multiple of 16 so bf16 activation blocks are sublane-tile aligned.
    TB = min(_round_up(pl.cdiv(B, 2), 16), MAX_BATCH_TILE)
    B_pad = _round_up(B, TB)

    x_seq = x_seq.astype(jnp.bfloat16)           # bf16 activation storage in HBM
    h0 = h0.astype(jnp.float32)
    if B_pad != B:
        x_seq = jnp.pad(x_seq, ((0, 0), (0, B_pad - B), (0, 0)))
        h0 = jnp.pad(h0, ((0, B_pad - B), (0, 0)))

    grid = (B_pad // TB, T)

    def w_spec(arr):
        # Constant index_map -> weights stay VMEM-resident across all steps.
        return pl.BlockSpec(arr.shape, lambda b, t: (0,) * arr.ndim)

    q, h_fin = pl.pallas_call(
        agent_rollout_kernel,
        out_shape=(jax.ShapeDtypeStruct((T, B_pad, out_store), jnp.float32),
                   jax.ShapeDtypeStruct((B_pad, H), jnp.float32)),
        grid=grid,
        in_specs=[
            pl.BlockSpec((None, TB, in_dim), lambda b, t: (t, b, 0)),  # x[t]
            pl.BlockSpec((TB, H), lambda b, t: (b, 0)),                # h0
            w_spec(kp["w1"]), w_spec(kp["b1"]),
            w_spec(kp["w2"]), w_spec(kp["b2"]),
            w_spec(kp["w_cat"]), w_spec(kp["b_cat"]),
            w_spec(kp["w_hh"]), w_spec(kp["b_hh"]),
        ],
        out_specs=(pl.BlockSpec((None, TB, out_store), lambda b, t: (t, b, 0)),
                   pl.BlockSpec((TB, H), lambda b, t: (b, 0))),
        scratch_shapes=[pltpu.VMEM((TB, H), jnp.float32)],   # h carry
        input_output_aliases={1: 1},                         # h0 -> final hidden
        compiler_params=pltpu.CompilerParams(
            dimension_semantics=("parallel", "arbitrary"),
            vmem_limit_bytes=32 * 1024 * 1024),
    )(x_seq, h0, kp["w1"], kp["b1"], kp["w2"], kp["b2"],
      kp["w_cat"], kp["b_cat"], kp["w_hh"], kp["b_hh"])

    return q[:, :B, :out_dim], h_fin[:B]


def agent_forward(x, h, kp, out_dim):
    """Single PyTorch forward() step: x [B, in_dim] -> (q [B, out_dim], h_new)."""
    q, h_new = agent_rollout(x[None], h, kp, out_dim)
    return q[0], h_new


def init_params(key, input_dim, output_dim):
    """Deterministic PyTorch-style uniform(-1/sqrt(fan_in), 1/sqrt(fan_in)) init (f32)."""
    H = LAYER_DIM
    ks = jax.random.split(key, 10)

    def unif(k, shape, fan_in):
        bound = 1.0 / jnp.sqrt(jnp.float32(fan_in))
        return jax.random.uniform(k, shape, jnp.float32, -bound, bound)

    return {
        "w1": unif(ks[0], (input_dim, H), input_dim),
        "b1": unif(ks[1], (1, H), input_dim),
        "w2": unif(ks[2], (H, H), H),
        "b2": unif(ks[3], (1, H), H),
        # GRUCell: torch weight_ih is (3H, H) -> stored transposed (H, 3H); gates (r,z,n)
        "w_ih": unif(ks[4], (H, 3 * H), H),
        "b_ih": unif(ks[5], (1, 3 * H), H),
        "w_hh": unif(ks[6], (H, 3 * H), H),
        "b_hh": unif(ks[7], (1, 3 * H), H),
        "w3": unif(ks[8], (H, output_dim), H),
        "b3": unif(ks[9], (1, output_dim), H),
    }


def prepare_kernel_params(p, output_dim):
    """bf16 weights, f32 biases, fc3 fused into w_ih; fused width padded to 256."""
    H = LAYER_DIM
    out_mxu = _round_up(output_dim, 256)   # 3H + out_mxu is a multiple of 256
    w3p = jnp.zeros((H, out_mxu), jnp.float32).at[:, :output_dim].set(p["w3"])
    b3p = jnp.zeros((1, out_mxu), jnp.float32).at[:, :output_dim].set(p["b3"])
    return {
        "w1": p["w1"].astype(jnp.bfloat16),
        "b1": p["b1"],
        "w2": p["w2"].astype(jnp.bfloat16),
        "b2": p["b2"],
        "w_cat": jnp.concatenate([p["w_ih"], w3p], axis=1).astype(jnp.bfloat16),
        "b_cat": jnp.concatenate([p["b_ih"], b3p], axis=1),
        "w_hh": p["w_hh"].astype(jnp.bfloat16),
        "b_hh": p["b_hh"],
    }


def reference_quantized(x_seq, h, kp, out_dim):
    """Pure-JAX rollout reference using the same bf16-operand / f32-accum matmuls."""
    H = LAYER_DIM

    def mm(a, w):
        return jnp.dot(a.astype(jnp.bfloat16), w, preferred_element_type=jnp.float32)

    qs = []
    for t in range(x_seq.shape[0]):
        x = x_seq[t]
        x1 = jax.nn.relu(mm(x, kp["w1"]) + kp["b1"])
        x2 = jax.nn.relu(mm(x1, kp["w2"]) + kp["b2"])
        gi_q = mm(x2, kp["w_cat"]) + kp["b_cat"]
        gh = mm(h, kp["w_hh"]) + kp["b_hh"]
        r = jax.nn.sigmoid(gi_q[:, :H] + gh[:, :H])
        z = jax.nn.sigmoid(gi_q[:, H:2 * H] + gh[:, H:2 * H])
        n = jnp.tanh(gi_q[:, 2 * H:3 * H] + r * gh[:, 2 * H:3 * H])
        h = (1.0 - z) * n + z * h
        qs.append(gi_q[:, 3 * H:3 * H + out_dim])
    return jnp.stack(qs), h


def reference_f32(x_seq, h, p):
    """Full-precision rollout matching the PyTorch module exactly, step by step."""
    H = LAYER_DIM
    qs = []
    for t in range(x_seq.shape[0]):
        x = x_seq[t]
        x1 = jax.nn.relu(x @ p["w1"] + p["b1"])
        x2 = jax.nn.relu(x1 @ p["w2"] + p["b2"])
        gi = x2 @ p["w_ih"] + p["b_ih"]
        gh = h @ p["w_hh"] + p["b_hh"]
        r = jax.nn.sigmoid(gi[:, :H] + gh[:, :H])
        z = jax.nn.sigmoid(gi[:, H:2 * H] + gh[:, H:2 * H])
        n = jnp.tanh(gi[:, 2 * H:] + r * gh[:, 2 * H:])
        h = (1.0 - z) * n + z * h
        qs.append(x2 @ p["w3"] + p["b3"])
    return jnp.stack(qs), h


if __name__ == "__main__":
    INPUT_DIM, OUTPUT_DIM, BATCH, T = 128, 64, 8, 8

    key = jax.random.PRNGKey(0)
    k_params, k_x = jax.random.split(key)
    params = init_params(k_params, INPUT_DIM, OUTPUT_DIM)
    kparams = prepare_kernel_params(params, OUTPUT_DIM)

    x_seq = jax.random.normal(k_x, (T, BATCH, INPUT_DIM), jnp.float32)
    h0 = jnp.zeros((BATCH, LAYER_DIM), jnp.float32)   # rnn_hidden = None -> zeros

    q, h_new = agent_rollout(x_seq, h0, kparams, OUTPUT_DIM)
    jax.block_until_ready((q, h_new))

    # Tight check against the bf16-matmul rollout reference (same quantization).
    q_qr, h_qr = reference_quantized(x_seq, h0, kparams, OUTPUT_DIM)
    assert jnp.allclose(q, q_qr, atol=5e-3, rtol=5e-3)
    assert jnp.allclose(h_new, h_qr, atol=5e-3, rtol=5e-3)

    # Loose check against the full f32 PyTorch-equivalent rollout.
    q_fr, h_fr = reference_f32(x_seq, h0, params)
    assert jnp.allclose(q, q_fr, atol=1e-1, rtol=1e-1)
    assert jnp.allclose(h_new, h_fr, atol=1e-1, rtol=1e-1)

    print("KERNEL_OK")
</pallas_src>

<mosaic_0001>
module attributes {stable_mosaic.version = 11 : i64} {
  func.func @agent_rollout_kernel(%arg0: i32, %arg1: i32, %arg2: memref<1x16x128xbf16, #tpu.memory_space<vmem>>, %arg3: memref<16x256xf32, #tpu.memory_space<vmem>>, %arg4: memref<128x256xbf16, #tpu.memory_space<vmem>>, %arg5: memref<1x256xf32, #tpu.memory_space<vmem>>, %arg6: memref<256x256xbf16, #tpu.memory_space<vmem>>, %arg7: memref<1x256xf32, #tpu.memory_space<vmem>>, %arg8: memref<256x1024xbf16, #tpu.memory_space<vmem>>, %arg9: memref<1x1024xf32, #tpu.memory_space<vmem>>, %arg10: memref<256x768xbf16, #tpu.memory_space<vmem>>, %arg11: memref<1x768xf32, #tpu.memory_space<vmem>>, %arg12: memref<1x16x128xf32, #tpu.memory_space<vmem>>, %arg13: memref<16x256xf32, #tpu.memory_space<vmem>>, %arg14: memref<16x256xf32, #tpu.memory_space<vmem>>) attributes {dimension_semantics = [#tpu.dimension_semantics<parallel>, #tpu.dimension_semantics<arbitrary>], iteration_bounds = array<i64: 1, 8>, scalar_prefetch = 0 : i64, scratch_operands = 1 : i64, tpu.core_type = #tpu.core_type<tc>, window_params = [{transform_indices = @transform_0, window_bounds = array<i64: 1, 16, 128>}, {transform_indices = @transform_1, window_bounds = array<i64: 16, 256>}, {pipeline_mode = #tpu.pipeline_mode<synchronous>, transform_indices = @transform_2, window_bounds = array<i64: 128, 256>}, {pipeline_mode = #tpu.pipeline_mode<synchronous>, transform_indices = @transform_3, window_bounds = array<i64: 1, 256>}, {pipeline_mode = #tpu.pipeline_mode<synchronous>, transform_indices = @transform_4, window_bounds = array<i64: 256, 256>}, {pipeline_mode = #tpu.pipeline_mode<synchronous>, transform_indices = @transform_5, window_bounds = array<i64: 1, 256>}, {pipeline_mode = #tpu.pipeline_mode<synchronous>, transform_indices = @transform_6, window_bounds = array<i64: 256, 1024>}, {pipeline_mode = #tpu.pipeline_mode<synchronous>, transform_indices = @transform_7, window_bounds = array<i64: 1, 1024>}, {pipeline_mode = #tpu.pipeline_mode<synchronous>, transform_indices = @transform_8, window_bounds = array<i64: 256, 768>}, {pipeline_mode = #tpu.pipeline_mode<synchronous>, transform_indices = @transform_9, window_bounds = array<i64: 1, 768>}, {transform_indices = @transform_10, window_bounds = array<i64: 1, 16, 128>}, {transform_indices = @transform_11, window_bounds = array<i64: 16, 256>}]} {
    %c0_i32 = arith.constant 0 : i32
    %0 = arith.cmpi eq, %arg1, %c0_i32 : i32
    %1 = arith.extui %0 : i1 to i32
    %c0_i32_0 = arith.constant 0 : i32
    %2 = arith.cmpi ne, %1, %c0_i32_0 : i32
    scf.if %2 {
      %c0_35 = arith.constant 0 : index
      %c0_36 = arith.constant 0 : index
      %67 = vector.load %arg3[%c0_35, %c0_36] : memref<16x256xf32, #tpu.memory_space<vmem>>, vector<16x256xf32>
      %c0_37 = arith.constant 0 : index
      %c0_38 = arith.constant 0 : index
      %68 = vector.load %arg14[%c0_37, %c0_38] : memref<16x256xf32, #tpu.memory_space<vmem>>, vector<16x256xf32>
      tpu.vector_store %arg14[%c0_37, %c0_38], %67 {strides = array<i32>} : memref<16x256xf32, #tpu.memory_space<vmem>>, vector<16x256xf32>,
    } else {
    }
    %c0 = arith.constant 0 : index
    %c0_1 = arith.constant 0 : index
    %3 = vector.load %arg14[%c0, %c0_1] : memref<16x256xf32, #tpu.memory_space<vmem>>, vector<16x256xf32>
    %c0_2 = arith.constant 0 : index
    %c0_3 = arith.constant 0 : index
    %c0_4 = arith.constant 0 : index
    %4 = vector.load %arg2[%c0_2, %c0_3, %c0_4] : memref<1x16x128xbf16, #tpu.memory_space<vmem>>, vector<1x16x128xbf16>
    %5 = vector.shape_cast %4 : vector<1x16x128xbf16> to vector<16x128xbf16>
    %c0_5 = arith.constant 0 : index
    %c0_6 = arith.constant 0 : index
    %6 = vector.load %arg4[%c0_5, %c0_6] : memref<128x256xbf16, #tpu.memory_space<vmem>>, vector<128x256xbf16>
    %cst = arith.constant dense<0.000000e+00> : vector<16x256xf32>
    %7 = tpu.matmul %5, %6, %cst {dimension_numbers = #tpu.dot_dimension_numbers<[1], [0], [0], [1], [0, 0, 1, 1], [], []>} : vector<16x128xbf16>, vector<128x256xbf16>, vector<16x256xf32> -> vector<16x256xf32>
    %c0_7 = arith.constant 0 : index
    %c0_8 = arith.constant 0 : index
    %8 = vector.load %arg5[%c0_7, %c0_8] : memref<1x256xf32, #tpu.memory_space<vmem>>, vector<1x256xf32>
    %9 = vector.broadcast %8 : vector<1x256xf32> to vector<16x256xf32>
    %10 = arith.addf %7, %9 : vector<16x256xf32>
    %cst_9 = arith.constant 0.000000e+00 : f32
    %11 = vector.broadcast %cst_9 : f32 to vector<16x256xf32>
    %12 = arith.maximumf %10, %11 : vector<16x256xf32>
    %13 = arith.truncf %12 : vector<16x256xf32> to vector<16x256xbf16>
    %c0_10 = arith.constant 0 : index
    %c0_11 = arith.constant 0 : index
    %14 = vector.load %arg6[%c0_10, %c0_11] : memref<256x256xbf16, #tpu.memory_space<vmem>>, vector<256x256xbf16>
    %cst_12 = arith.constant dense<0.000000e+00> : vector<16x256xf32>
    %15 = tpu.matmul %13, %14, %cst_12 {dimension_numbers = #tpu.dot_dimension_numbers<[1], [0], [0], [1], [0, 0, 1, 1], [], []>} : vector<16x256xbf16>, vector<256x256xbf16>, vector<16x256xf32> -> vector<16x256xf32>
    %c0_13 = arith.constant 0 : index
    %c0_14 = arith.constant 0 : index
    %16 = vector.load %arg7[%c0_13, %c0_14] : memref<1x256xf32, #tpu.memory_space<vmem>>, vector<1x256xf32>
    %17 = vector.broadcast %16 : vector<1x256xf32> to vector<16x256xf32>
    %18 = arith.addf %15, %17 : vector<16x256xf32>
    %cst_15 = arith.constant 0.000000e+00 : f32
    %19 = vector.broadcast %cst_15 : f32 to vector<16x256xf32>
    %20 = arith.maximumf %18, %19 : vector<16x256xf32>
    %21 = arith.truncf %20 : vector<16x256xf32> to vector<16x256xbf16>
    %c0_16 = arith.constant 0 : index
    %c0_17 = arith.constant 0 : index
    %22 = vector.load %arg8[%c0_16, %c0_17] : memref<256x1024xbf16, #tpu.memory_space<vmem>>, vector<256x1024xbf16>
    %cst_18 = arith.constant dense<0.000000e+00> : vector<16x1024xf32>
    %23 = tpu.matmul %21, %22, %cst_18 {dimension_numbers = #tpu.dot_dimension_numbers<[1], [0], [0], [1], [0, 0, 1, 1], [], []>} : vector<16x256xbf16>, vector<256x1024xbf16>, vector<16x1024xf32> -> vector<16x1024xf32>
    %c0_19 = arith.constant 0 : index
    %c0_20 = arith.constant 0 : index
    %24 = vector.load %arg9[%c0_19, %c0_20] : memref<1x1024xf32, #tpu.memory_space<vmem>>, vector<1x1024xf32>
    %25 = vector.broadcast %24 : vector<1x1024xf32> to vector<16x1024xf32>
    %26 = arith.addf %23, %25 : vector<16x1024xf32>
    %27 = arith.truncf %3 : vector<16x256xf32> to vector<16x256xbf16>
    %c0_21 = arith.constant 0 : index
    %c0_22 = arith.constant 0 : index
    %28 = vector.load %arg10[%c0_21, %c0_22] : memref<256x768xbf16, #tpu.memory_space<vmem>>, vector<256x768xbf16>
    %cst_23 = arith.constant dense<0.000000e+00> : vector<16x768xf32>
    %29 = tpu.matmul %27, %28, %cst_23 {dimension_numbers = #tpu.dot_dimension_numbers<[1], [0], [0], [1], [0, 0, 1, 1], [], []>} : vector<16x256xbf16>, vector<256x768xbf16>, vector<16x768xf32> -> vector<16x768xf32>
    %c0_24 = arith.constant 0 : index
    %c0_25 = arith.constant 0 : index
    %30 = vector.load %arg11[%c0_24, %c0_25] : memref<1x768xf32, #tpu.memory_space<vmem>>, vector<1x768xf32>
    %31 = vector.broadcast %30 : vector<1x768xf32> to vector<16x768xf32>
    %32 = arith.addf %29, %31 : vector<16x768xf32>
    %33 = vector.extract_strided_slice %26 {offsets = [0, 0], sizes = [16, 256], strides = [1, 1]} : vector<16x1024xf32> to vector<16x256xf32>
    %34 = vector.extract_strided_slice %32 {offsets = [0, 0], sizes = [16, 256], strides = [1, 1]} : vector<16x768xf32> to vector<16x256xf32>
    %35 = arith.addf %33, %34 : vector<16x256xf32>
    %36 = arith.negf %35 : vector<16x256xf32>
    %37 = math.exp %36 : vector<16x256xf32>
    %cst_26 = arith.constant 1.000000e+00 : f32
    %38 = vector.broadcast %cst_26 : f32 to vector<16x256xf32>
    %39 = arith.addf %38, %37 : vector<16x256xf32>
    %40 = arith.divf %38, %39 : vector<16x256xf32>
    %41 = vector.extract_strided_slice %26 {offsets = [0, 256], sizes = [16, 256], strides = [1, 1]} : vector<16x1024xf32> to vector<16x256xf32>
    %42 = vector.extract_strided_slice %32 {offsets = [0, 256], sizes = [16, 256], strides = [1, 1]} : vector<16x768xf32> to vector<16x256xf32>
    %43 = arith.addf %41, %42 : vector<16x256xf32>
    %44 = arith.negf %43 : vector<16x256xf32>
    %45 = math.exp %44 : vector<16x256xf32>
    %cst_27 = arith.constant 1.000000e+00 : f32
    %46 = vector.broadcast %cst_27 : f32 to vector<16x256xf32>
    %47 = arith.addf %46, %45 : vector<16x256xf32>
    %48 = arith.divf %46, %47 : vector<16x256xf32>
    %49 = vector.extract_strided_slice %26 {offsets = [0, 512], sizes = [16, 256], strides = [1, 1]} : vector<16x1024xf32> to vector<16x256xf32>
    %50 = vector.extract_strided_slice %32 {offsets = [0, 512], sizes = [16, 256], strides = [1, 1]} : vector<16x768xf32> to vector<16x256xf32>
    %51 = arith.mulf %40, %50 : vector<16x256xf32>
    %52 = arith.addf %49, %51 : vector<16x256xf32>
    %53 = math.tanh %52 : vector<16x256xf32>
    %cst_28 = arith.constant 1.000000e+00 : f32
    %54 = vector.broadcast %cst_28 : f32 to vector<16x256xf32>
    %55 = arith.subf %54, %48 : vector<16x256xf32>
    %56 = arith.mulf %55, %53 : vector<16x256xf32>
    %57 = arith.mulf %48, %3 : vector<16x256xf32>
    %58 = arith.addf %56, %57 : vector<16x256xf32>
    %c0_29 = arith.constant 0 : index
    %c0_30 = arith.constant 0 : index
    %59 = vector.load %arg14[%c0_29, %c0_30] : memref<16x256xf32, #tpu.memory_space<vmem>>, vector<16x256xf32>
    tpu.vector_store %arg14[%c0_29, %c0_30], %58 {strides = array<i32>} : memref<16x256xf32, #tpu.memory_space<vmem>>, vector<16x256xf32>,
    %60 = vector.extract_strided_slice %26 {offsets = [0, 768], sizes = [16, 128], strides = [1, 1]} : vector<16x1024xf32> to vector<16x128xf32>
    %c0_31 = arith.constant 0 : index
    %c0_32 = arith.constant 0 : index
    %c0_33 = arith.constant 0 : index
    %61 = vector.load %arg12[%c0_31, %c0_32, %c0_33] : memref<1x16x128xf32, #tpu.memory_space<vmem>>, vector<1x16x128xf32>
    %62 = vector.shape_cast %61 : vector<1x16x128xf32> to vector<16x128xf32>
    %63 = vector.shape_cast %60 : vector<16x128xf32> to vector<1x16x128xf32>
    tpu.vector_store %arg12[%c0_31, %c0_32, %c0_33], %63 {strides = array<i32>} : memref<1x16x128xf32, #tpu.memory_space<vmem>>, vector<1x16x128xf32>,
    %c7_i32 = arith.constant 7 : i32
    %64 = arith.cmpi eq, %arg1, %c7_i32 : i32
    %65 = arith.extui %64 : i1 to i32
    %c0_i32_34 = arith.constant 0 : i32
    %66 = arith.cmpi ne, %65, %c0_i32_34 : i32
    scf.if %66 {
      %c0_35 = arith.constant 0 : index
      %c0_36 = arith.constant 0 : index
      %67 = vector.load %arg13[%c0_35, %c0_36] : memref<16x256xf32, #tpu.memory_space<vmem>>, vector<16x256xf32>
      tpu.vector_store %arg13[%c0_35, %c0_36], %58 {strides = array<i32>} : memref<16x256xf32, #tpu.memory_space<vmem>>, vector<16x256xf32>,
    } else {
    }
    return
  }
  func.func @transform_0(%arg0: i32, %arg1: i32) -> (i32, i32, i32) {
    %c0_i32 = arith.constant 0 : i32
    %c0_i32_0 = arith.constant 0 : i32
    return %arg1, %arg0, %c0_i32 : i32, i32, i32
  }
  func.func @transform_1(%arg0: i32, %arg1: i32) -> (i32, i32) {
    %c0_i32 = arith.constant 0 : i32
    %c0_i32_0 = arith.constant 0 : i32
    return %arg0, %c0_i32 : i32, i32
  }
  func.func @transform_2(%arg0: i32, %arg1: i32) -> (i32, i32) {
    %c0_i32 = arith.constant 0 : i32
    %c0_i32_0 = arith.constant 0 : i32
    %c0_i32_1 = arith.constant 0 : i32
    return %c0_i32, %c0_i32_0 : i32, i32
  }
  func.func @transform_3(%arg0: i32, %arg1: i32) -> (i32, i32) {
    %c0_i32 = arith.constant 0 : i32
    %c0_i32_0 = arith.constant 0 : i32
    %c0_i32_1 = arith.constant 0 : i32
    return %c0_i32, %c0_i32_0 : i32, i32
  }
  func.func @transform_4(%arg0: i32, %arg1: i32) -> (i32, i32) {
    %c0_i32 = arith.constant 0 : i32
    %c0_i32_0 = arith.constant 0 : i32
    %c0_i32_1 = arith.constant 0 : i32
    return %c0_i32, %c0_i32_0 : i32, i32
  }
  func.func @transform_5(%arg0: i32, %arg1: i32) -> (i32, i32) {
    %c0_i32 = arith.constant 0 : i32
    %c0_i32_0 = arith.constant 0 : i32
    %c0_i32_1 = arith.constant 0 : i32
    return %c0_i32, %c0_i32_0 : i32, i32
  }
  func.func @transform_6(%arg0: i32, %arg1: i32) -> (i32, i32) {
    %c0_i32 = arith.constant 0 : i32
    %c0_i32_0 = arith.constant 0 : i32
    %c0_i32_1 = arith.constant 0 : i32
    return %c0_i32, %c0_i32_0 : i32, i32
  }
  func.func @transform_7(%arg0: i32, %arg1: i32) -> (i32, i32) {
    %c0_i32 = arith.constant 0 : i32
    %c0_i32_0 = arith.constant 0 : i32
    %c0_i32_1 = arith.constant 0 : i32
    return %c0_i32, %c0_i32_0 : i32, i32
  }
  func.func @transform_8(%arg0: i32, %arg1: i32) -> (i32, i32) {
    %c0_i32 = arith.constant 0 : i32
    %c0_i32_0 = arith.constant 0 : i32
    %c0_i32_1 = arith.constant 0 : i32
    return %c0_i32, %c0_i32_0 : i32, i32
  }
  func.func @transform_9(%arg0: i32, %arg1: i32) -> (i32, i32) {
    %c0_i32 = arith.constant 0 : i32
    %c0_i32_0 = arith.constant 0 : i32
    %c0_i32_1 = arith.constant 0 : i32
    return %c0_i32, %c0_i32_0 : i32, i32
  }
  func.func @transform_10(%arg0: i32, %arg1: i32) -> (i32, i32, i32) {
    %c0_i32 = arith.constant 0 : i32
    %c0_i32_0 = arith.constant 0 : i32
    return %arg1, %arg0, %c0_i32 : i32, i32, i32
  }
  func.func @transform_11(%arg0: i32, %arg1: i32) -> (i32, i32) {
    %c0_i32 = arith.constant 0 : i32
    %c0_i32_0 = arith.constant 0 : i32
    return %arg0, %c0_i32 : i32, i32
  }
}

</mosaic_0001>

<bundles_post_ra>
// kernel: tpu_custom_call.1
= control target key start
LH: loop header
LB: loop body
LE: loop exit
PB: predicated region body
PF: predicated region fallthrough
CT: control target
= control target key end

     0   :  { %s5448_s0 = inlined_call_operand.vmem [shape: bf16[8,16,128], index: 0, kind: input, shape index: {}]   ;;  %s5449_s1 = inlined_call_operand.hbm [shape: f32[16,256], index: 1, kind: input, shape index: {}, may-alias: {1,11}]   ;;  %s5450_s2 = inlined_call_operand.hbm [shape: bf16[128,256], index: 2, kind: input, shape index: {}]   ;;  %s5451_s3 = inlined_call_operand.hbm [shape: f32[1,256], index: 3, kind: input, shape index: {}]   ;;  %s5452_s4 = inlined_call_operand.hbm [shape: bf16[256,256], index: 4, kind: input, shape index: {}]   ;;  %s5453_s5 = inlined_call_operand.hbm [shape: f32[1,256], index: 5, kind: input, shape index: {}]   ;;  %s5454_s6 = inlined_call_operand.hbm [shape: bf16[256,1024], index: 6, kind: input, shape index: {}]   ;;  %s5455_s7 = inlined_call_operand.vmem [shape: f32[1,1024], index: 7, kind: input, shape index: {}]   ;;  %s5456_s8 = inlined_call_operand.hbm [shape: bf16[256,768], index: 8, kind: input, shape index: {}]   ;;  %s5457_s9 = inlined_call_operand.hbm [shape: f32[1,768], index: 9, kind: input, shape index: {}]   ;;  %s5458_s10 = inlined_call_operand.hbm [shape: f32[8,16,128], index: 10, kind: output, shape index: {0}]   ;;  %s5459_s11 = inlined_call_operand.hbm [shape: f32[16,256], index: 11, kind: output, shape index: {1}, may-alias: {1,11}]  }
   0x1   :  { %5467 = sst [smem:[#allocation34_spill]] %s5450_s2 }
   0x2   :  { %5468 = sst [smem:[#allocation35_spill]] %s5452_s4 }
   0x3   :  { %5469 = sst [smem:[#allocation36_spill]] %s5454_s6 }
   0x4   :  { %5470 = sst [smem:[#allocation37_spill]] %s5459_s11 }
   0x5   :  { %17 = vsyncpa [#allocation4], 0 }
   0x6   :  { %18 = vsyncpa [#allocation7], 0 }
   0x7   :  { %19 = vsyncpa [#allocation10], 0 }
   0x8   :  { %20 = vsyncpa [#allocation13], 0 }
   0x9   :  { %21 = vsyncpa [#allocation16], 0 }
   0xa   :  { %22 = vsyncpa [#allocation5], 0 }
   0xb   :  { %24 = vsyncpa [#allocation5 + $0x1], 0 }
   0xc   :  { %25 = vsyncpa [#allocation19], 0  ;;  %s5046_s17 = smov 0   ;;  %s5048_s18 = smov 0  }
   0xd   :  { %s5050_s19 = smov 0   ;;  %s5052_s20 = smov 0  }
   0xe   :  { %s5054_s21 = smov 0   ;;  %s5056_s22 = smov 0  }
   0xf LB: > { %5471 = sst [smem:[#allocation27_spill]] %s4943_s17  ;;  %s3066_s23 = sadd.s32 4294967295, %s4963_s22   ;;  %s4963_s22 = sphi %s5056_s22, %s31_s22   ;;  %s4959_s21 = sphi %s5054_s21, %s5500_s21   ;;  %s4955_s20 = sphi %s5052_s20, %s5499_s20   ;;  %s4951_s19 = sphi %s5050_s19, %s5498_s19   ;;  %s4947_s18 = sphi %s5048_s18, %s5502_s18   ;;  %s4943_s17 = sphi %s5046_s17, %s5501_s17  }
  0x10   : > { %5472 = sst [smem:[#allocation28_spill]] %s4951_s19  ;;  %s3067_s24 = sadd.s32 4294967294, %s4963_s22  }
  0x11   : > { %5473 = sst [smem:[#allocation29_spill]] %s4959_s21  ;;  %s40_s25 = sadd.s32 1, %s4959_s21 }
  0x12   : > { %5474 = sst [smem:[#allocation30_spill]] %s4963_s22  ;;  %s274_s26 = sadd.s32 1, %s4951_s19 }
  0x13   : > { %p41_p0 = scmp.ge.s32.totalorder %s40_s25, 8  ;;  %p284_p1 = scmp.ne.s32.totalorder %s4951_s19, %s4947_s18 }
  0x14   : > { %p5082_p2 = scmp.eq.s32.totalorder %s3066_s23, 7  ;;  %p290_p3 = scmp.ne.s32.totalorder %s4947_s18, %s4943_s17 }
  0x15   : > { %s5504_s25 = smov (%p41_p0, %s40_s25), 0  ;;  %p291_p5 = scmp.eq.s32.totalorder %s3067_s24, 7 }
  0x16   : > { %5476 = sst [smem:[#allocation31_spill]] %s5504_s25  ;;  %p5092_p4 = por %p5082_p2, %p284_p1 }
  0x17   : > { %s269_s29 = ssub.s32 %s4959_s21, %s5504_s25  ;;  %p3068_p6 = scmp.ge.s32.totalorder %s4963_s22, 1 }
  0x18   : > { %p272_p7 = scmp.eq.s32.totalorder %s269_s29, 0  ;;  %p5099_p8 = por %p291_p5, %p290_p3 }
  0x19   : > { %p324_p9 = scmp.lt.s32.totalorder %s4963_s22, 9  ;;  %p5111_p11 = scmp.eq.s32.totalorder %s3066_s23, 0 }
  0x1a   : > { %s5478_s30 = scalar_select %p5099_p8, 1, 0 }
  0x1b   : > { %s5105_s12 = scalar_select %p272_p7, %s4951_s19, %s274_s26  }
  0x1c   : > { %5479 = sst [smem:[#allocation32_spill]] %s5478_s30  ;;  %p5107_p10 = pnand %p3068_p6, %p324_p9 }
  0x1d   : > { %5480 = sst [smem:[#allocation33_spill]] %s5105_s12  ;;  %s4965_s29 = smov [#allocation6]  }
  0x1e   : > { %s5483_s2 = sld [smem:[#allocation34_spill]]  ;;  %p4432_p12 = pneg %p5107_p10 }
  0x1f   : > { %s355_s26 = sshll.u32 %s4965_s29, 4  ;;  %s5485_s4 = sld [smem:[#allocation35_spill]]  ;;  %s356_s26 = int_to_ptr.vmem [resolvable:$true] %s355_s26 }
  0x20   : > { %p5122_p13 = pnand %p5111_p11, %p4432_p12  ;;  %s4966_s15 = smov 128  }
  0x21   : > { %s4967_s16 = smov 8   ;;  %s5486_s6 = sld [smem:[#allocation36_spill]] }
  0x22   : > { %s4968_s30 = smov [#allocation9]   ;;  %s4969_s22 = smov [#allocation12]  }
  0x23   : > { %s381_s17 = sshll.u32 %s4968_s30, 4  ;;  %s407_s21 = sshll.u32 %s4969_s22, 4  ;;  %s382_s17 = int_to_ptr.vmem [resolvable:$true] %s381_s17  ;;  %s408_s21 = int_to_ptr.vmem [resolvable:$true] %s407_s21 }
  0x24   : > { %s353_s24 = sshll.u32 %s5483_s2, 4  ;;  %s4970_s23 = smov 512   ;;  %s354_s24 = int_to_ptr.hbm [resolvable:$true] %s353_s24 }
  0x25   : > { %s379_s12 = sshll.u32 %s5485_s4, 4  ;;  %s4971_s4 = smov 32   ;;  %s380_s12 = int_to_ptr.hbm [resolvable:$true] %s379_s12 }
  0x26   : > { %4438 = dma.hbm_to_vmem [thread:$0]  (!%p5122_p13), %s354_s24, 2048, %s356_s26, [#allocation7], %s4966_s15, %s4966_s15, %s4967_s16  }
  0x27   : > { %s405_s19 = sshll.u32 %s5486_s6, 4  ;;  %s339_s2 = sshll.u32 %s5449_s1, 4  ;;  %s406_s19 = int_to_ptr.hbm [resolvable:$true] %s405_s19  ;;  %s340_s2 = int_to_ptr.hbm [resolvable:$true] %s339_s2 }
  0x28   : > { %4444 = dma.hbm_to_vmem [thread:$0]  (!%p5122_p13), %s380_s12, 4096, %s382_s17, [#allocation10], %s4966_s15, %s4966_s15, %s4967_s16  }
  0x29   : > { %4450 = dma.hbm_to_vmem [thread:$0]  (!%p5122_p13), %s406_s19, 16384, %s408_s21, [#allocation13], %s4970_s23, %s4970_s23, %s4971_s4  }
  0x2a   : > { %s4972_s26 = smov [#allocation3]   ;;  %s368_s17 = sshll.u32 %s5451_s3, 4  ;;  %s369_s17 = int_to_ptr.hbm [resolvable:$true] %s368_s17 }
  0x2b   : > { %s341_s30 = sshll.u32 %s4972_s26, 4  ;;  %s4973_s22 = smov 256   ;;  %s342_s30 = int_to_ptr.vmem [resolvable:$true] %s341_s30 }
  0x2c   : > { %s4974_s12 = smov 16   ;;  %s4975_s4 = smov [#allocation8]  }
  0x2d   : > { %4435 = dma.hbm_to_vmem [thread:$0]  (!%p5122_p13), %s340_s2, 512, %s342_s30, [#allocation4], %s4973_s22, %s4973_s22, %s4974_s12  }
  0x2e   : > { %s370_s19 = sshll.u32 %s4975_s4, 4  ;;  %s394_s16 = sshll.u32 %s5453_s5, 4  ;;  %s371_s19 = int_to_ptr.vmem [resolvable:$true] %s370_s19  ;;  %s395_s16 = int_to_ptr.hbm [resolvable:$true] %s394_s16 }
  0x2f   : > { %4441 = dma.hbm_to_vmem [thread:$0]  (!%p5122_p13), %s369_s17, 32, %s371_s19, [#allocation7]  }
  0x30   : > { %s422_s23 = sshll.u32 %s5456_s8, 4  ;;  %s4976_s24 = smov [#allocation11]   ;;  %s423_s23 = int_to_ptr.hbm [resolvable:$true] %s422_s23 }
  0x31   : > { %s396_s26 = sshll.u32 %s4976_s24, 4  ;;  %s4977_s2 = smov [#allocation14]   ;;  %s397_s26 = int_to_ptr.vmem [resolvable:$true] %s396_s26 }
  0x32   : > { %4447 = dma.hbm_to_vmem [thread:$0]  (!%p5122_p13), %s395_s16, 32, %s397_s26, [#allocation10]  }
  0x33   : > { %s424_s30 = sshll.u32 %s4977_s2, 4  ;;  %s4978_s29 = smov 384   ;;  %s425_s30 = int_to_ptr.vmem [resolvable:$true] %s424_s30 }
  0x34   : > { %s4979_s22 = smov 24   ;;  %s437_s4 = sshll.u32 %s5457_s9, 4  ;;  %s438_s4 = int_to_ptr.hbm [resolvable:$true] %s437_s4 }
  0x35   : > { %4453 = dma.hbm_to_vmem [thread:$0]  (!%p5122_p13), %s423_s23, 12288, %s425_s30, [#allocation13], %s4978_s29, %s4978_s29, %s4979_s22  }
  0x36   : > { %s4980_s19 = smov [#allocation15]   ;;  %465 = sbr.rel (%p5107_p10) target bundleno = 753 (0x2f1), region = 60 }
  0x37   : > { %s439_s15 = sshll.u32 %s4980_s19, 4  ;;  %s440_s15 = int_to_ptr.vmem [resolvable:$true] %s439_s15 }
  0x38   : > { %4456 = dma.hbm_to_vmem [thread:$0]  (!%p5122_p13), %s438_s4, 96, %s440_s15, [#allocation16]  }
  0x3b   : > { %4914 = dma.done.wait (%p5111_p11), [#allocation4], 512  }
  0x3c   : > { %4916 = vsyncadd (%p5111_p11), [#allocation4], 4294966784 }
  0x3d   : > { %4918 = dma.done.wait (%p5111_p11), [#allocation7], 2080  }
  0x3e   : > { %4920 = vsyncadd (%p5111_p11), [#allocation7], 4294965216 }
  0x3f   : > { %4922 = dma.done.wait (%p5111_p11), [#allocation10], 4128  }
  0x40   : > { %4924 = vsyncadd (%p5111_p11), [#allocation10], 4294963168 }
  0x41   : > { %4926 = dma.done.wait (%p5111_p11), [#allocation13], 28672  }
  0x42   : > { %4928 = vsyncadd (%p5111_p11), [#allocation13], 4294938624 }
  0x43   : > { %4930 = dma.done.wait (%p5111_p11), [#allocation16], 96  }
  0x44   : > { %4932 = vsyncadd (%p5111_p11), [#allocation16], 4294967200  ;;  %s540_s25 = sand.u32 1, %s4947_s18   ;;  %p546_p0 = scmp.lt.s32.totalorder %s4955_s20, 7 }
  0x45   : > { %s3087_s13 = sshll.u32 %s540_s25, 4  ;;  %p3090_p1 = scmp.ne.s32.totalorder %s4955_s20, 0 }
  0x46   : > { %s547_s11 = scalar_select %p546_p0, %s4955_s20, 7 }
  0x47   : > { %s5195_s24 = scalar_lea.vmem [#allocation17], %s3087_s13  ;;  %561 = sbr.rel (%p3090_p1) target bundleno = 81 (0x51), region = 96 }
  0x48   : > { %s4135_s16 = sshll.u32 %s547_s11, 3 }
  0x49   : > { %s5193_s23 = scalar_lea.vmem %s5448_s0, %s4135_s16 }
  0x4c   : > { %v562_v0 = vld [vmem:[#allocation3] sm:$0xff]  ;;  %v563_v1 = vld [vmem:[#allocation3 + $0x8] sm:$0xff]  ;;  %v564_v2 = vld [vmem:[#allocation3 + $0x10] sm:$0xff] }
  0x4d   : > { %566 = vst [vmem:[#allocation2 + $0x10] sm:$0xff] %v562_v0  ;;  %v565_v3 = vld [vmem:[#allocation3 + $0x18] sm:$0xff] }
  0x4e   : > { %567 = vst [vmem:[#allocation2] sm:$0xff] %v563_v1 }
  0x4f   : > { %568 = vst [vmem:[#allocation2 + $0x18] sm:$0xff] %v564_v2 }
  0x50   : > { %569 = vst [vmem:[#allocation2 + $0x8] sm:$0xff] %v565_v3 }
  0x51 PF: > { %v3153_v4 = vld [vmem:[#allocation6 + $0x70] sm:$0xf]  ;;  %v4152_v5 = vld [vmem:[#allocation6 + $0x74] sm:$0xf0]  ;;  %v4151_v6 = vld [vmem:[#allocation6 + $0x74] sm:$0xf] }
  0x52   : > { %v3154_v7 = vor.u32 %v4152_v5, %v3153_v4  ;;  %v3155_v8 = vld [vmem:[#allocation6 + $0x78] sm:$0xf0]  ;;  %v3145_v9 = vld [vmem:[#allocation6 + $0x60] sm:$0xf]  ;;  %v4150_v10 = vld [vmem:[#allocation6 + $0x64] sm:$0xf0] }
  0x53   : > { %v3158_v11 = vor.u32 %v4151_v6, %v3155_v8  ;;  %v4149_v12 = vld [vmem:[#allocation6 + $0x64] sm:$0xf]  ;;  %v3147_v13 = vld [vmem:[#allocation6 + $0x68] sm:$0xf0]  ;;  %v3146_v14 = vor.u32 %v4150_v10, %v3145_v9  ;;  %v3137_v16 = vld [vmem:[#allocation6 + $0x50] sm:$0xf] }
  0x54   : > { %684 = vmatpush.bf16.msra.mxu0 %v3154_v7  ;;  %v3150_v15 = vor.u32 %v4149_v12, %v3147_v13  ;;  %v4148_v17 = vld [vmem:[#allocation6 + $0x54] sm:$0xf0]  ;;  %v4147_v18 = vld [vmem:[#allocation6 + $0x54] sm:$0xf]  ;;  %v3139_v19 = vld [vmem:[#allocation6 + $0x58] sm:$0xf0] }
  0x55   : > { %698 = vmatpush.bf16.msra.mxu1 %v3158_v11  ;;  %v3138_v20 = vor.u32 %v4148_v17, %v3137_v16  ;;  %v3142_v21 = vor.u32 %v4147_v18, %v3139_v19  ;;  %v3129_v22 = vld [vmem:[#allocation6 + $0x40] sm:$0xf]  ;;  %v4146_v23 = vld [vmem:[#allocation6 + $0x44] sm:$0xf0]  ;;  %v4145_v24 = vld [vmem:[#allocation6 + $0x44] sm:$0xf] }
  0x56   : > { %v3131_v25 = vld [vmem:[#allocation6 + $0x48] sm:$0xf0]  ;;  %v3130_v26 = vor.u32 %v4146_v23, %v3129_v22  ;;  %v3217_v27 = vld [vmem:[#allocation9 + $0x70] sm:$0xf]  ;;  %v4168_v28 = vld [vmem:[#allocation9 + $0x74] sm:$0xf0] }
  0x57   : > { %v3281_v29 = vld [vmem:[#allocation9 + $0xf0] sm:$0xf]  ;;  %v3134_v30 = vor.u32 %v4145_v24, %v3131_v25  ;;  %v4144_v32 = vld [vmem:[#allocation6 + $0x34] sm:$0xf0]  ;;  %v3218_v33 = vor.u32 %v4168_v28, %v3217_v27  ;;  %v3123_v36 = vld [vmem:[#allocation6 + $0x38] sm:$0xf0] }
  0x58   : > { %685 = vmatpush.bf16.msra.mxu0 %v3146_v14  ;;  %v3121_v31 = vld [vmem:[#allocation6 + $0x30] sm:$0xf]  ;;  %v4184_v34 = vld [vmem:[#allocation9 + $0xf4] sm:$0xf0]  ;;  %v4143_v35 = vld [vmem:[#allocation6 + $0x34] sm:$0xf] }
  0x59   : > { %699 = vmatpush.bf16.msra.mxu1 %v3150_v15  ;;  %v3282_v37 = vor.u32 %v4184_v34, %v3281_v29  ;;  %v3209_v38 = vld [vmem:[#allocation9 + $0x60] sm:$0xf]  ;;  %916 = vmatpush.bf16.msra.mxu2 %v3218_v33  ;;  %v4166_v39 = vld [vmem:[#allocation9 + $0x64] sm:$0xf0]  ;;  %v3122_v42 = vor.u32 %v4144_v32, %v3121_v31  ;;  %v3126_v47 = vor.u32 %v4143_v35, %v3123_v36  ;;  %v3201_v49 = vld [vmem:[#allocation9 + $0x50] sm:$0xf] }
  0x5a   : > { %v3273_v40 = vld [vmem:[#allocation9 + $0xe0] sm:$0xf]  ;;  %v4182_v41 = vld [vmem:[#allocation9 + $0xe4] sm:$0xf0]  ;;  %v3210_v45 = vor.u32 %v4166_v39, %v3209_v38  ;;  %v4164_v50 = vld [vmem:[#allocation9 + $0x54] sm:$0xf0] }
  0x5b   : > { %v3113_v43 = vld [vmem:[#allocation6 + $0x20] sm:$0xf]  ;;  %v4142_v44 = vld [vmem:[#allocation6 + $0x24] sm:$0xf0]  ;;  %930 = vmatpush.bf16.msra.mxu3 %v3282_v37  ;;  %v3274_v46 = vor.u32 %v4182_v41, %v3273_v40  ;;  %v4141_v48 = vld [vmem:[#allocation6 + $0x24] sm:$0xf]  ;;  %v3202_v54 = vor.u32 %v4164_v50, %v3201_v49 }
  0x5c   : > { %686 = vmatpush.bf16.msra.mxu0 %v3138_v20  ;;  %v3115_v51 = vld [vmem:[#allocation6 + $0x28] sm:$0xf0]  ;;  %v3265_v52 = vld [vmem:[#allocation9 + $0xd0] sm:$0xf]  ;;  %v4180_v53 = vld [vmem:[#allocation9 + $0xd4] sm:$0xf0]  ;;  %v3114_v55 = vor.u32 %v4142_v44, %v3113_v43 }
  0x5d   : > { %700 = vmatpush.bf16.msra.mxu1 %v3142_v21  ;;  %917 = vmatpush.bf16.msra.mxu2 %v3210_v45  ;;  %v3105_v56 = vld [vmem:[#allocation6 + $0x10] sm:$0xf]  ;;  %v3266_v57 = vor.u32 %v4180_v53, %v3265_v52  ;;  %v3193_v58 = vld [vmem:[#allocation9 + $0x40] sm:$0xf]  ;;  %v4162_v59 = vld [vmem:[#allocation9 + $0x44] sm:$0xf0]  ;;  %v3118_v60 = vor.u32 %v4141_v48, %v3115_v51 }
  0x5e   : > { %v4140_v61 = vld [vmem:[#allocation6 + $0x14] sm:$0xf0]  ;;  %v3257_v62 = vld [vmem:[#allocation9 + $0xc0] sm:$0xf]  ;;  %v4178_v63 = vld [vmem:[#allocation9 + $0xc4] sm:$0xf0]  ;;  %v3194_v2 = vor.u32 %v4162_v59, %v3193_v58 }
  0x5f   : > { %931 = vmatpush.bf16.msra.mxu3 %v3274_v46  ;;  %v4139_v0 = vld [vmem:[#allocation6 + $0x14] sm:$0xf]  ;;  %v3107_v1 = vld [vmem:[#allocation6 + $0x18] sm:$0xf0]  ;;  %v3106_v3 = vor.u32 %v4140_v61, %v3105_v56  ;;  %v3258_v4 = vor.u32 %v4178_v63, %v3257_v62  ;;  %v3097_v6 = vld [vmem:[#allocation6] sm:$0xf] }
  0x60   : > { %687 = vmatpush.bf16.msra.mxu0 %v3130_v26  ;;  %v3110_v5 = vor.u32 %v4139_v0, %v3107_v1  ;;  %v4138_v7 = vld [vmem:[#allocation6 + $0x4] sm:$0xf0]  ;;  %v4137_v8 = vld [vmem:[#allocation6 + $0x4] sm:$0xf]  ;;  %v3099_v9 = vld [vmem:[#allocation6 + $0x8] sm:$0xf0] }
  0x61   : > { %701 = vmatpush.bf16.msra.mxu1 %v3134_v30  ;;  %918 = vmatpush.bf16.msra.mxu2 %v3202_v54  ;;  %v4167_v10 = vld [vmem:[#allocation9 + $0x74] sm:$0xf]  ;;  %v3219_v11 = vld [vmem:[#allocation9 + $0x78] sm:$0xf0]  ;;  %v3098_v14 = vor.u32 %v4138_v7, %v3097_v6  ;;  %v3102_v15 = vor.u32 %v4137_v8, %v3099_v9  ;;  %v4165_v18 = vld [vmem:[#allocation9 + $0x64] sm:$0xf] }
  0x62   : > { %v4183_v12 = vld [vmem:[#allocation9 + $0xf4] sm:$0xf]  ;;  %v3283_v13 = vld [vmem:[#allocation9 + $0xf8] sm:$0xf0]  ;;  %v3222_v16 = vor.u32 %v4167_v10, %v3219_v11  ;;  %v3211_v19 = vld [vmem:[#allocation9 + $0x68] sm:$0xf0] }
  0x63   : > { %932 = vmatpush.bf16.msra.mxu3 %v3266_v57  ;;  %v3286_v17 = vor.u32 %v4183_v12, %v3283_v13  ;;  %v4136_v20 = vld [vmem:[%s5193_s23] sm:$0xff]  ;;  %v3275_v22 = vld [vmem:[#allocation9 + $0xe8] sm:$0xf0]  ;;  %v3214_v23 = vor.u32 %v4165_v18, %v3211_v19  ;;  %v4163_v25 = vld [vmem:[#allocation9 + $0x54] sm:$0xf]  ;;  %p4127_p3 = scmp.ne.s32.totalorder %s4955_s20, 7 }
  0x64   : > { %688 = vmatpush.bf16.msra.mxu0 %v3122_v42  ;;  %v4181_v21 = vld [vmem:[#allocation9 + $0xe4] sm:$0xf]  ;;  %v3203_v26 = vld [vmem:[#allocation9 + $0x58] sm:$0xf0]  ;;  %v4179_v27 = vld [vmem:[#allocation9 + $0xd4] sm:$0xf] }
  0x65   : > { %702 = vmatpush.bf16.msra.mxu1 %v3126_v47  ;;  %919 = vmatpush.bf16.msra.mxu2 %v3194_v2  ;;  %v3278_v24 = vor.u32 %v4181_v21, %v3275_v22  ;;  %v3267_v28 = vld [vmem:[#allocation9 + $0xd8] sm:$0xf0]  ;;  %v3206_v29 = vor.u32 %v4163_v25, %v3203_v26  ;;  %v4161_v31 = vld [vmem:[#allocation9 + $0x44] sm:$0xf]  ;;  %v3195_v32 = vld [vmem:[#allocation9 + $0x48] sm:$0xf0] }
  0x66   : > { %v3270_v30 = vor.u32 %v4179_v27, %v3267_v28  ;;  %v4177_v33 = vld [vmem:[#allocation9 + $0xc4] sm:$0xf]  ;;  %v3259_v34 = vld [vmem:[#allocation9 + $0xc8] sm:$0xf0]  ;;  %v3198_v35 = vor.u32 %v4161_v31, %v3195_v32  ;;  %v3185_v37 = vld [vmem:[#allocation9 + $0x30] sm:$0xf] }
  0x67   : > { %933 = vmatpush.bf16.msra.mxu3 %v3258_v4  ;;  %v3262_v36 = vor.u32 %v4177_v33, %v3259_v34  ;;  %v4160_v38 = vld [vmem:[#allocation9 + $0x34] sm:$0xf0]  ;;  %v3249_v39 = vld [vmem:[#allocation9 + $0xb0] sm:$0xf]  ;;  %v4159_v42 = vld [vmem:[#allocation9 + $0x34] sm:$0xf] }
  0x68   : > { %689 = vmatpush.bf16.msra.mxu0 %v3114_v55  ;;  %v3186_v40 = vor.u32 %v4160_v38, %v3185_v37  ;;  %v4176_v41 = vld [vmem:[#allocation9 + $0xb4] sm:$0xf0]  ;;  %v3187_v43 = vld [vmem:[#allocation9 + $0x38] sm:$0xf0]  ;;  %v4175_v46 = vld [vmem:[#allocation9 + $0xb4] sm:$0xf] }
  0x69   : > { %703 = vmatpush.bf16.msra.mxu1 %v3118_v60  ;;  %v3250_v44 = vor.u32 %v4176_v41, %v3249_v39  ;;  %v3190_v45 = vor.u32 %v4159_v42, %v3187_v43  ;;  %v3251_v47 = vld [vmem:[#allocation9 + $0xb8] sm:$0xf0]  ;;  %v3177_v49 = vld [vmem:[#allocation9 + $0x20] sm:$0xf]  ;;  %v4158_v50 = vld [vmem:[#allocation9 + $0x24] sm:$0xf0] }
  0x6a   : > { %920 = vmatpush.bf16.msra.mxu2 %v3186_v40  ;;  %v3254_v48 = vor.u32 %v4175_v46, %v3251_v47  ;;  %v3178_v51 = vor.u32 %v4158_v50, %v3177_v49  ;;  %v3241_v52 = vld [vmem:[#allocation9 + $0xa0] sm:$0xf]  ;;  %v4174_v53 = vld [vmem:[#allocation9 + $0xa4] sm:$0xf0]  ;;  %v4157_v54 = vld [vmem:[#allocation9 + $0x24] sm:$0xf] }
  0x6b   : > { %934 = vmatpush.bf16.msra.mxu3 %v3250_v44  ;;  %v3242_v55 = vor.u32 %v4174_v53, %v3241_v52  ;;  %v3179_v56 = vld [vmem:[#allocation9 + $0x28] sm:$0xf0]  ;;  %v4173_v57 = vld [vmem:[#allocation9 + $0xa4] sm:$0xf]  ;;  %v3169_v61 = vld [vmem:[#allocation9 + $0x10] sm:$0xf] }
  0x6c   : > { %690 = vmatpush.bf16.msra.mxu0 %v3106_v3  ;;  %v3243_v58 = vld [vmem:[#allocation9 + $0xa8] sm:$0xf0]  ;;  %v3182_v59 = vor.u32 %v4157_v54, %v3179_v56  ;;  %v4156_v62 = vld [vmem:[#allocation9 + $0x14] sm:$0xf0]  ;;  %v3233_v63 = vld [vmem:[#allocation9 + $0x90] sm:$0xf] }
  0x6d   : > { %704 = vmatpush.bf16.msra.mxu1 %v3110_v5  ;;  %v3246_v60 = vor.u32 %v4173_v57, %v3243_v58  ;;  %v3170_v0 = vor.u32 %v4156_v62, %v3169_v61  ;;  %v4172_v1 = vld [vmem:[#allocation9 + $0x94] sm:$0xf0]  ;;  %v4155_v2 = vld [vmem:[#allocation9 + $0x14] sm:$0xf]  ;;  %v3171_v3 = vld [vmem:[#allocation9 + $0x18] sm:$0xf0] }
  0x6e   : > { %921 = vmatpush.bf16.msra.mxu2 %v3178_v51  ;;  %v3234_v4 = vor.u32 %v4172_v1, %v3233_v63  ;;  %v3174_v5 = vor.u32 %v4155_v2, %v3171_v3  ;;  %v4171_v6 = vld [vmem:[#allocation9 + $0x94] sm:$0xf]  ;;  %v3235_v7 = vld [vmem:[#allocation9 + $0x98] sm:$0xf0]  ;;  %v3161_v9 = vld [vmem:[#allocation9] sm:$0xf] }
  0x6f   : > { %935 = vmatpush.bf16.msra.mxu3 %v3242_v55  ;;  %v3238_v8 = vor.u32 %v4171_v6, %v3235_v7  ;;  %v4154_v10 = vld [vmem:[#allocation9 + $0x4] sm:$0xf0]  ;;  %v3225_v11 = vld [vmem:[#allocation9 + $0x80] sm:$0xf]  ;;  %v4169_v18 = vld [vmem:[#allocation9 + $0x84] sm:$0xf] }
  0x70   : > { %691 = vmatpush.bf16.msra.mxu0 %v3098_v14  ;;  %v3162_v12 = vor.u32 %v4154_v10, %v3161_v9  ;;  %v4170_v13 = vld [vmem:[#allocation9 + $0x84] sm:$0xf0]  ;;  %v4153_v14 = vld [vmem:[#allocation9 + $0x4] sm:$0xf]  ;;  %v3227_v19 = vld [vmem:[#allocation9 + $0x88] sm:$0xf0] }
  0x71   : > { %705 = vmatpush.bf16.msra.mxu1 %v3102_v15  ;;  %v3163_v15 = vld [vmem:[#allocation9 + $0x8] sm:$0xf0]  ;;  %v3709_v21 = vld [vmem:[#allocation12 + $0x3c0] sm:$0xf]  ;;  %v3711_v25 = vld [vmem:[#allocation12 + $0x3e0] sm:$0xf0] }
  0x72   : > { %922 = vmatpush.bf16.msra.mxu2 %v3170_v0  ;;  %v4293_v22 = vld [vmem:[#allocation12 + $0x3dc] sm:$0xf0]  ;;  %v4234_v34 = vld [vmem:[#allocation12 + $0x1c4] sm:$0xf]  ;;  %v592_v7 = vld [vmem:[#allocation8] sm:$0x3] }
  0x73   : > { %692 = vmatmul.bf16.vlgmr.msra.gmra.mxu0 %v4136_v20  ;;  %936 = vmatpush.bf16.msra.mxu3 %v3234_v4  ;;  %v3681_v26 = vld [vmem:[#allocation12 + $0x380] sm:$0xf]  ;;  %v4276_v41 = vld [vmem:[#allocation12 + $0x344] sm:$0xf] }
  0x74   : > { %944 = vmatpush.bf16.msrb.mxu0 %v3222_v16  ;;  %706 = vmatmul.bf16.vlgmr.msra.gmra.mxu1 %v4136_v20  ;;  %v3226_v16 = vor.u32 %v4170_v13, %v3225_v11  ;;  %v3230_v20 = vor.u32 %v4169_v18, %v3227_v19  ;;  %v4286_v27 = vld [vmem:[#allocation12 + $0x39c] sm:$0xf0]  ;;  %v3655_v42 = vld [vmem:[#allocation12 + $0x360] sm:$0xf0] }
  0x75   : > { %958 = vmatpush.bf16.msrb.mxu1 %v3286_v17  ;;  %v3166_v17 = vor.u32 %v4153_v14, %v3163_v15  ;;  %v3485_v31 = vld [vmem:[#allocation12 + $0x1c0] sm:$0xf]  ;;  %v3682_v32 = vor.u32 %v4286_v27, %v3681_v26  ;;  %v4227_v46 = vld [vmem:[#allocation12 + $0x184] sm:$0xf]  ;;  %v3658_v52 = vor.u32 %v4276_v41, %v3655_v42 }
  0x76   : > { %923 = vmatpush.bf16.msra.mxu2 %v3162_v12  ;;  %v4237_v33 = vld [vmem:[#allocation12 + $0x1dc] sm:$0xf0]  ;;  %v3459_v47 = vld [vmem:[#allocation12 + $0x1a0] sm:$0xf0] }
  0x77   : > { %937 = vmatpush.bf16.msra.mxu3 %v3226_v16  ;;  %v3486_v37 = vor.u32 %v4237_v33, %v3485_v31  ;;  %v3653_v39 = vld [vmem:[#allocation12 + $0x340] sm:$0xf]  ;;  %v3462_v49 = vor.u32 %v4227_v46, %v3459_v47  ;;  %v4220_v55 = vld [vmem:[#allocation12 + $0x144] sm:$0xf] }
  0x78   : > { %945 = vmatpush.bf16.msrb.mxu0 %v3214_v23  ;;  %v4290_v23 = vld [vmem:[#allocation12 + $0x3c4] sm:$0xf]  ;;  %v4279_v40 = vld [vmem:[#allocation12 + $0x35c] sm:$0xf0] }
  0x79   : > { %959 = vmatpush.bf16.msrb.mxu1 %v3278_v24  ;;  %v3710_v24 = vor.u32 %v4293_v22, %v3709_v21  ;;  %v3714_v28 = vor.u32 %v4290_v23, %v3711_v25  ;;  %v3457_v43 = vld [vmem:[#allocation12 + $0x180] sm:$0xf]  ;;  %v4269_v56 = vld [vmem:[#allocation12 + $0x304] sm:$0xf]  ;;  %v594_v22 = vperm.slane %v592_v7, 0 }
  0x7a   : > { %v4230_v44 = vld [vmem:[#allocation12 + $0x19c] sm:$0xf0]  ;;  %1698 = vmatpush.bf16.msrb.mxu2 %v3486_v37  ;;  %v3627_v57 = vld [vmem:[#allocation12 + $0x320] sm:$0xf0] }
  0x7b   : > { %1712 = vmatpush.bf16.msrb.mxu3 %v3710_v24  ;;  %v3625_v50 = vld [vmem:[#allocation12 + $0x300] sm:$0xf]  ;;  %v3431_v58 = vld [vmem:[#allocation12 + $0x160] sm:$0xf0]  ;;  %v3630_v2 = vor.u32 %v4269_v56, %v3627_v57 }
  0x7c   : > { %946 = vmatpush.bf16.msrb.mxu0 %v3206_v29  ;;  %v4283_v29 = vld [vmem:[#allocation12 + $0x384] sm:$0xf]  ;;  %v4272_v51 = vld [vmem:[#allocation12 + $0x31c] sm:$0xf0] }
  0x7d   : > { %960 = vmatpush.bf16.msrb.mxu1 %v3270_v30  ;;  %v3683_v30 = vld [vmem:[#allocation12 + $0x3a0] sm:$0xf0]  ;;  %v3429_v53 = vld [vmem:[#allocation12 + $0x140] sm:$0xf]  ;;  %v3626_v62 = vor.u32 %v4272_v51, %v3625_v50 }
  0x7e   : > { %v4223_v54 = vld [vmem:[#allocation12 + $0x15c] sm:$0xf0]  ;;  %v4213_v0 = vld [vmem:[#allocation12 + $0x104] sm:$0xf] }
  0x7f   : > { %1713 = vmatpush.bf16.msrb.mxu3 %v3682_v32  ;;  %v3401_v61 = vld [vmem:[#allocation12 + $0x100] sm:$0xf]  ;;  %v3403_v1 = vld [vmem:[#allocation12 + $0x120] sm:$0xf0] }
  0x80   : > { %947 = vmatpush.bf16.msrb.mxu0 %v3198_v35  ;;  %v3487_v35 = vld [vmem:[#allocation12 + $0x1e0] sm:$0xf0]  ;;  %v4216_v63 = vld [vmem:[#allocation12 + $0x11c] sm:$0xf0]  ;;  %v3406_v9 = vor.u32 %v4213_v0, %v3403_v1 }
  0x81   : > { %961 = vmatpush.bf16.msrb.mxu1 %v3262_v36  ;;  %v3686_v36 = vor.u32 %v4283_v29, %v3683_v30  ;;  %v3490_v38 = vor.u32 %v4234_v34, %v3487_v35  ;;  %v3597_v3 = vld [vmem:[#allocation12 + $0x2c0] sm:$0xf]  ;;  %v3599_v6 = vld [vmem:[#allocation12 + $0x2e0] sm:$0xf0]  ;;  %v595_v30 = vperm.slane %v592_v7, 1 }
  0x82   : > { %v4265_v4 = vld [vmem:[#allocation12 + $0x2dc] sm:$0xf0]  ;;  %v4206_v13 = vld [vmem:[#allocation12 + $0xc4] sm:$0xf] }
  0x83   : > { %v3373_v10 = vld [vmem:[#allocation12 + $0xc0] sm:$0xf]  ;;  %v3598_v11 = vor.u32 %v4265_v4, %v3597_v3  ;;  %v3375_v14 = vld [vmem:[#allocation12 + $0xe0] sm:$0xf0]  ;;  %v3493_v4 = vld [vmem:[#allocation12 + $0x1c8] sm:$0xf] }
  0x84   : > { %948 = vmatpush.bf16.msrb.mxu0 %v3190_v45  ;;  %v3458_v45 = vor.u32 %v4230_v44, %v3457_v43  ;;  %v4209_v12 = vld [vmem:[#allocation12 + $0xdc] sm:$0xf0]  ;;  %v3571_v21 = vld [vmem:[#allocation12 + $0x2a0] sm:$0xf0]  ;;  %v3378_v24 = vor.u32 %v4206_v13, %v3375_v14  ;;  %v3689_v14 = vld [vmem:[#allocation12 + $0x388] sm:$0xf] }
  0x85   : > { %962 = vmatpush.bf16.msrb.mxu1 %v3254_v48  ;;  %v3654_v48 = vor.u32 %v4279_v40, %v3653_v39  ;;  %v4258_v18 = vld [vmem:[#allocation12 + $0x29c] sm:$0xf0]  ;;  %v3374_v23 = vor.u32 %v4209_v12, %v3373_v10  ;;  %v3347_v29 = vld [vmem:[#allocation12 + $0xa0] sm:$0xf0]  ;;  %v3495_v10 = vld [vmem:[#allocation12 + $0x1e8] sm:$0xf0] }
  0x86   : > { %1699 = vmatpush.bf16.msrb.mxu2 %v3458_v45  ;;  %v3345_v25 = vld [vmem:[#allocation12 + $0x80] sm:$0xf]  ;;  %v4248_v34 = vld [vmem:[#allocation12 + $0x244] sm:$0xf] }
  0x87   : > { %1714 = vmatpush.bf16.msrb.mxu3 %v3654_v48  ;;  %v4202_v27 = vld [vmem:[#allocation12 + $0x9c] sm:$0xf0]  ;;  %v3543_v35 = vld [vmem:[#allocation12 + $0x260] sm:$0xf0] }
  0x88   : > { %949 = vmatpush.bf16.msrb.mxu0 %v3182_v59  ;;  %v3430_v59 = vor.u32 %v4223_v54, %v3429_v53  ;;  %v3541_v32 = vld [vmem:[#allocation12 + $0x240] sm:$0xf]  ;;  %v4192_v42 = vld [vmem:[#allocation12 + $0x44] sm:$0xf]  ;;  %v3546_v46 = vor.u32 %v4248_v34, %v3543_v35  ;;  %v3717_v53 = vld [vmem:[#allocation12 + $0x3c8] sm:$0xf] }
  0x89   : > { %963 = vmatpush.bf16.msrb.mxu1 %v3246_v60  ;;  %v3434_v60 = vor.u32 %v4220_v55, %v3431_v58  ;;  %v4251_v33 = vld [vmem:[#allocation12 + $0x25c] sm:$0xf0]  ;;  %v3319_v43 = vld [vmem:[#allocation12 + $0x60] sm:$0xf0]  ;;  %v4294_v54 = vld [vmem:[#allocation12 + $0x3e4] sm:$0xf0] }
  0x8a   : > { %1700 = vmatpush.bf16.msrb.mxu2 %v3430_v59  ;;  %v3542_v40 = vor.u32 %v4251_v33, %v3541_v32  ;;  %v4195_v41 = vld [vmem:[#allocation12 + $0x5c] sm:$0xf0]  ;;  %v3322_v57 = vor.u32 %v4192_v42, %v3319_v43  ;;  %v4291_v58 = vld [vmem:[#allocation12 + $0x3cc] sm:$0xf]  ;;  %v4185_v0 = vld [vmem:[#allocation12 + $0x4] sm:$0xf]  ;;  %v3718_v12 = vor.u32 %v4294_v54, %v3717_v53 }
  0x8b   : > { %1715 = vmatpush.bf16.msrb.mxu3 %v3626_v62  ;;  %v3513_v47 = vld [vmem:[#allocation12 + $0x200] sm:$0xf]  ;;  %v3719_v59 = vld [vmem:[#allocation12 + $0x3e8] sm:$0xf0]  ;;  %v3291_v3 = vld [vmem:[#allocation12 + $0x20] sm:$0xf0] }
  0x8c   : > { %950 = vmatpush.bf16.msrb.mxu0 %v3174_v5  ;;  %v4262_v5 = vld [vmem:[#allocation12 + $0x2c4] sm:$0xf]  ;;  %v4244_v48 = vld [vmem:[#allocation12 + $0x21c] sm:$0xf0]  ;;  %v3722_v13 = vor.u32 %v4291_v58, %v3719_v59  ;;  %v3437_v42 = vld [vmem:[#allocation12 + $0x148] sm:$0xf] }
  0x8d   : > { %964 = vmatpush.bf16.msrb.mxu1 %v3238_v8  ;;  %v3402_v8 = vor.u32 %v4216_v63, %v3401_v61  ;;  %v3602_v16 = vor.u32 %v4262_v5, %v3599_v6  ;;  %v4188_v63 = vld [vmem:[#allocation12 + $0x1c] sm:$0xf0]  ;;  %v3514_v6 = vor.u32 %v4244_v48, %v3513_v47  ;;  %v4224_v43 = vld [vmem:[#allocation12 + $0x164] sm:$0xf0]  ;;  %v3411_v58 = vld [vmem:[#allocation12 + $0x128] sm:$0xf0] }
  0x8e   : > { %v3605_v48 = vld [vmem:[#allocation12 + $0x2c8] sm:$0xf] }
  0x8f   : > { %1701 = vmatpush.bf16.msrb.mxu2 %v3402_v8  ;;  %1716 = vmatpush.bf16.msrb.mxu3 %v3598_v11  ;;  %v4238_v8 = vld [vmem:[#allocation12 + $0x1e4] sm:$0xf0] }
  0x90   : > { %951 = vmatpush.bf16.msrb.mxu0 %v3166_v17  ;;  %v3569_v17 = vld [vmem:[#allocation12 + $0x280] sm:$0xf]  ;;  %v3409_v54 = vld [vmem:[#allocation12 + $0x108] sm:$0xf] }
  0x91   : > { %965 = vmatpush.bf16.msrb.mxu1 %v3230_v20  ;;  %v4255_v20 = vld [vmem:[#allocation12 + $0x284] sm:$0xf]  ;;  %v3570_v26 = vor.u32 %v4258_v18, %v3569_v17  ;;  %v3294_v17 = vor.u32 %v4185_v0, %v3291_v3  ;;  %v4284_v18 = vld [vmem:[#allocation12 + $0x38c] sm:$0xf]  ;;  %v4210_v3 = vld [vmem:[#allocation12 + $0xe4] sm:$0xf0] }
  0x92   : > { %v3574_v31 = vor.u32 %v4255_v20, %v3571_v21  ;;  %v3494_v20 = vor.u32 %v4238_v8, %v3493_v4  ;;  %v3579_v0 = vld [vmem:[#allocation12 + $0x2a8] sm:$0xf0]  ;;  %v3549_v8 = vld [vmem:[#allocation12 + $0x248] sm:$0xf] }
  0x93   : > { %1702 = vmatpush.bf16.msrb.mxu2 %v3374_v23  ;;  %1717 = vmatpush.bf16.msrb.mxu3 %v3570_v26  ;;  %v4231_v23 = vld [vmem:[#allocation12 + $0x1a4] sm:$0xf0]  ;;  %v4207_v4 = vld [vmem:[#allocation12 + $0xcc] sm:$0xf] }
  0x94   : > { %1726 = vmatpush.bf16.msra.mxu0 %v3490_v38  ;;  %v3317_v38 = vld [vmem:[#allocation12 + $0x40] sm:$0xf] }
  0x95   : > { %1740 = vmatpush.bf16.msra.mxu1 %v3714_v28  ;;  %v4199_v28 = vld [vmem:[#allocation12 + $0x84] sm:$0xf]  ;;  %v3318_v56 = vor.u32 %v4195_v41, %v3317_v38 }
  0x96   : > { %v3350_v37 = vor.u32 %v4199_v28, %v3347_v29  ;;  %v3661_v28 = vld [vmem:[#allocation12 + $0x348] sm:$0xf] }
  0x97   : > { %1718 = vmatpush.bf16.msrb.mxu3 %v3542_v40  ;;  %v4280_v29 = vld [vmem:[#allocation12 + $0x364] sm:$0xf0]  ;;  %v3635_v40 = vld [vmem:[#allocation12 + $0x328] sm:$0xf0] }
  0x98   : > { %1727 = vmatpush.bf16.msra.mxu0 %v3462_v49  ;;  %v4241_v49 = vld [vmem:[#allocation12 + $0x204] sm:$0xf]  ;;  %v3662_v34 = vor.u32 %v4280_v29, %v3661_v28  ;;  %v4193_v29 = vld [vmem:[#allocation12 + $0x4c] sm:$0xf] }
  0x99   : > { %1741 = vmatpush.bf16.msra.mxu1 %v3686_v36  ;;  %v3346_v36 = vor.u32 %v4202_v27, %v3345_v25  ;;  %v3467_v25 = vld [vmem:[#allocation12 + $0x1a8] sm:$0xf0] }
  0x9b   : > { %1703 = vmatpush.bf16.msrb.mxu2 %v3346_v36  ;;  %1719 = vmatpush.bf16.msrb.mxu3 %v3514_v6  ;;  %v3633_v36 = vld [vmem:[#allocation12 + $0x308] sm:$0xf]  ;;  %v3383_v6 = vld [vmem:[#allocation12 + $0xe8] sm:$0xf0] }
  0x9c   : > { %1728 = vmatpush.bf16.msra.mxu0 %v3434_v60  ;;  %v3289_v60 = vld [vmem:[#allocation12] sm:$0xf] }
  0x9d   : > { %1742 = vmatpush.bf16.msra.mxu1 %v3658_v52  ;;  %v3515_v52 = vld [vmem:[#allocation12 + $0x220] sm:$0xf0] }
  0x9e   : > { %v3518_v7 = vor.u32 %v4241_v49, %v3515_v52  ;;  %v4266_v49 = vld [vmem:[#allocation12 + $0x2e4] sm:$0xf0]  ;;  %v3607_v52 = vld [vmem:[#allocation12 + $0x2e8] sm:$0xf0] }
  0x9f   : > { %1704 = vmatpush.bf16.msrb.mxu2 %v3318_v56  ;;  %v4214_v56 = vld [vmem:[#allocation12 + $0x10c] sm:$0xf] }
  0xa0   : > { %1729 = vmatpush.bf16.msra.mxu0 %v3406_v9  ;;  %v4235_v9 = vld [vmem:[#allocation12 + $0x1cc] sm:$0xf]  ;;  %v3414_v59 = vor.u32 %v4214_v56, %v3411_v58 }
  0xa1   : > { %1743 = vmatpush.bf16.msra.mxu1 %v3630_v2  ;;  %v3498_v21 = vor.u32 %v4235_v9, %v3495_v10  ;;  %v4252_v9 = vld [vmem:[#allocation12 + $0x264] sm:$0xf0] }
  0xa2   : > { %v3550_v10 = vor.u32 %v4252_v9, %v3549_v8  ;;  %v4236_v8 = vld [vmem:[#allocation12 + $0x1d4] sm:$0xf] }
  0xa3   : > { %v3503_v9 = vld [vmem:[#allocation12 + $0x1f0] sm:$0xf0] }
  0xa4   : > { %1730 = vmatpush.bf16.msra.mxu0 %v3378_v24  ;;  %v4228_v24 = vld [vmem:[#allocation12 + $0x18c] sm:$0xf] }
  0xa5   : > { %1744 = vmatpush.bf16.msra.mxu1 %v3602_v16  ;;  %v3290_v16 = vor.u32 %v4188_v63, %v3289_v60  ;;  %v3470_v33 = vor.u32 %v4228_v24, %v3467_v25  ;;  %v3577_v60 = vld [vmem:[#allocation12 + $0x288] sm:$0xf]  ;;  %v4256_v63 = vld [vmem:[#allocation12 + $0x28c] sm:$0xf] }
  0xa6   : > { %v3523_v24 = vld [vmem:[#allocation12 + $0x228] sm:$0xf0] }
  0xa7   : > { %1705 = vmatpush.bf16.msrb.mxu2 %v3290_v16  ;;  %v4200_v16 = vld [vmem:[#allocation12 + $0x8c] sm:$0xf] }
  0xa8   : > { %1731 = vmatpush.bf16.msra.mxu0 %v3350_v37  ;;  %v4273_v37 = vld [vmem:[#allocation12 + $0x324] sm:$0xf0] }
  0xa9   : > { %1745 = vmatpush.bf16.msra.mxu1 %v3574_v31  ;;  %v3663_v31 = vld [vmem:[#allocation12 + $0x368] sm:$0xf0]  ;;  %v3634_v38 = vor.u32 %v4273_v37, %v3633_v36 }
  0xaa   : > { %v3299_v36 = vld [vmem:[#allocation12 + $0x28] sm:$0xf0] }
  0xac   : > { %1732 = vmatpush.bf16.msra.mxu0 %v3322_v57 }
  0xad   : > { %1746 = vmatpush.bf16.msra.mxu1 %v3546_v46  ;;  %v3439_v46 = vld [vmem:[#allocation12 + $0x168] sm:$0xf0] }
  0xb0   : > { %1733 = vmatpush.bf16.msra.mxu0 %v3294_v17 }
  0xb1   : > { %1747 = vmatpush.bf16.msra.mxu1 %v3518_v7  ;;  %v3386_v7 = vor.u32 %v4207_v4, %v3383_v6 }
  0xf0   : > { %v693_v15 = vpop.f32.mrf.mxu0 }
  0xf1   : > { %v707_v19 = vpop.f32.mrf.mxu1  ;;  %v694_v39 = vadd.f32 %v693_v15, %v594_v22  ;;  %v4287_v15 = vld [vmem:[#allocation12 + $0x3a4] sm:$0xf0] }
  0xf2   : > { %v708_v44 = vadd.f32 %v707_v19, %v595_v30  ;;  %v3691_v19 = vld [vmem:[#allocation12 + $0x3a8] sm:$0xf0]  ;;  %v3690_v26 = vor.u32 %v4287_v15, %v3689_v14  ;;  %v3353_v14 = vld [vmem:[#allocation12 + $0x88] sm:$0xf] }
  0xf3   : > { %v712_v61 = vmax.f32 %v694_v39, 0.0  ;;  %v3694_v27 = vor.u32 %v4284_v18, %v3691_v19  ;;  %v4270_v39 = vld [vmem:[#allocation12 + $0x30c] sm:$0xf]  ;;  %v4203_v15 = vld [vmem:[#allocation12 + $0xa4] sm:$0xf0] }
  0xf4   : > { %v713_v1 = vmax.f32 %v708_v44, 0.0  ;;  %v3638_v41 = vor.u32 %v4270_v39, %v3635_v40  ;;  %v4221_v44 = vld [vmem:[#allocation12 + $0x14c] sm:$0xf]  ;;  %v3354_v17 = vor.u32 %v4203_v15, %v3353_v14 }
  0xf5   : > { %v3442_v47 = vor.u32 %v4221_v44, %v3439_v46  ;;  %v3355_v18 = vld [vmem:[#allocation12 + $0xa8] sm:$0xf0] }
  0xf6   : > { %v3358_v19 = vor.u32 %v4200_v16, %v3355_v18  ;;  %v4278_v16 = vld [vmem:[#allocation12 + $0x354] sm:$0xf] }
  0xf8   : > { %v695_v45 = vpop.f32.mrf.mxu0 }
  0xf9   : > { %v696_v50 = vadd.f32 %v695_v45, %v594_v22  ;;  %v709_v51 = vpop.f32.mrf.mxu1  ;;  %v3465_v22 = vld [vmem:[#allocation12 + $0x188] sm:$0xf]  ;;  %v3438_v45 = vor.u32 %v4224_v43, %v3437_v42 }
  0xfa   : > { %v710_v55 = vadd.f32 %v709_v51, %v595_v30  ;;  %v4277_v30 = vld [vmem:[#allocation12 + $0x34c] sm:$0xf]  ;;  %v3466_v32 = vor.u32 %v4231_v23, %v3465_v22 }
  0xfb   : > { %v714_v62 = vmax.f32 %v696_v50, 0.0  ;;  %v3666_v35 = vor.u32 %v4277_v30, %v3663_v31  ;;  %v3606_v50 = vor.u32 %v4266_v49, %v3605_v48  ;;  %v4263_v51 = vld [vmem:[#allocation12 + $0x2cc] sm:$0xf] }
  0xfc   : > { %v715_v2 = vmax.f32 %v710_v55, 0.0  ;;  %v3610_v53 = vor.u32 %v4263_v51, %v3607_v52  ;;  %v4217_v55 = vld [vmem:[#allocation12 + $0x124] sm:$0xf0]  ;;  %v4242_v23 = vld [vmem:[#allocation12 + $0x20c] sm:$0xf] }
  0xfd   : > { %v716_v5 = vpack.c.bf16 %v714_v62, %v712_v61  ;;  %v3410_v57 = vor.u32 %v4217_v55, %v3409_v54  ;;  %v4259_v61 = vld [vmem:[#allocation12 + $0x2a4] sm:$0xf0]  ;;  %v3526_v25 = vor.u32 %v4242_v23, %v3523_v24  ;;  %v3327_v30 = vld [vmem:[#allocation12 + $0x68] sm:$0xf0]  ;;  %v4292_v54 = vld [vmem:[#allocation12 + $0x3d4] sm:$0xf] }
  0xfe   : > { %v717_v11 = vpack.c.bf16 %v715_v2, %v713_v1  ;;  %v3578_v62 = vor.u32 %v4259_v61, %v3577_v60  ;;  %v3582_v1 = vor.u32 %v4256_v63, %v3579_v0  ;;  %v3381_v2 = vld [vmem:[#allocation12 + $0xc8] sm:$0xf]  ;;  %v3330_v31 = vor.u32 %v4193_v29, %v3327_v30  ;;  %v3727_v55 = vld [vmem:[#allocation12 + $0x3f0] sm:$0xf0]  ;;  %v3697_v61 = vld [vmem:[#allocation12 + $0x390] sm:$0xf] }
  0xff   : > { %924 = vmatmul.bf16.vlgmr.msra.gmra.mxu2 %v716_v5  ;;  %952 = vmatmul.bf16.vlgmr.msrb.gmra.mxu0 %v716_v5  ;;  %v3382_v5 = vor.u32 %v4210_v3, %v3381_v2  ;;  %v3730_v60 = vor.u32 %v4292_v54, %v3727_v55  ;;  %v4285_v2 = vld [vmem:[#allocation12 + $0x394] sm:$0xf] }
 0x100   : > { %938 = vmatmul.bf16.vlgmr.msra.gmra.mxu3 %v717_v11  ;;  %966 = vmatmul.bf16.vlgmr.msrb.gmra.mxu1 %v717_v11  ;;  %v4249_v11 = vld [vmem:[#allocation12 + $0x24c] sm:$0xf]  ;;  %v3699_v3 = vld [vmem:[#allocation12 + $0x3b0] sm:$0xf0] }
 0x101   : > { %1768 = vmatpush.bf16.msra.mxu3 %v3718_v12  ;;  %1796 = vmatpush.bf16.msrb.mxu1 %v3722_v13  ;;  %v3551_v12 = vld [vmem:[#allocation12 + $0x268] sm:$0xf0]  ;;  %v4229_v23 = vld [vmem:[#allocation12 + $0x194] sm:$0xf] }
 0x102   : > { %1754 = vmatpush.bf16.msra.mxu2 %v3494_v20  ;;  %1782 = vmatpush.bf16.msrb.mxu0 %v3498_v21  ;;  %v3554_v13 = vor.u32 %v4249_v11, %v3551_v12  ;;  %v3521_v20 = vld [vmem:[#allocation12 + $0x208] sm:$0xf]  ;;  %v3702_v11 = vor.u32 %v4285_v2, %v3699_v3  ;;  %v3669_v12 = vld [vmem:[#allocation12 + $0x350] sm:$0xf]  ;;  %v3475_v24 = vld [vmem:[#allocation12 + $0x1b0] sm:$0xf0] }
 0x103   : > { %v4245_v21 = vld [vmem:[#allocation12 + $0x224] sm:$0xf0]  ;;  %v4271_v29 = vld [vmem:[#allocation12 + $0x314] sm:$0xf] }
 0x104   : > { %v3522_v22 = vor.u32 %v4245_v21, %v3521_v20  ;;  %v3473_v20 = vld [vmem:[#allocation12 + $0x190] sm:$0xf]  ;;  %v3643_v30 = vld [vmem:[#allocation12 + $0x330] sm:$0xf0] }
 0x105   : > { %1769 = vmatpush.bf16.msra.mxu3 %v3690_v26  ;;  %1797 = vmatpush.bf16.msrb.mxu1 %v3694_v27  ;;  %v3325_v26 = vld [vmem:[#allocation12 + $0x48] sm:$0xf]  ;;  %v3587_v54 = vld [vmem:[#allocation12 + $0x2b0] sm:$0xf0] }
 0x106   : > { %1755 = vmatpush.bf16.msra.mxu2 %v3466_v32  ;;  %1783 = vmatpush.bf16.msrb.mxu0 %v3470_v33  ;;  %v4196_v27 = vld [vmem:[#allocation12 + $0x64] sm:$0xf0]  ;;  %v4250_v2 = vld [vmem:[#allocation12 + $0x254] sm:$0xf] }
 0x107   : > { %v3326_v28 = vor.u32 %v4196_v27, %v3325_v26  ;;  %v3297_v32 = vld [vmem:[#allocation12 + $0x8] sm:$0xf]  ;;  %v3641_v27 = vld [vmem:[#allocation12 + $0x310] sm:$0xf]  ;;  %v3559_v3 = vld [vmem:[#allocation12 + $0x270] sm:$0xf0] }
 0x108   : > { %v4189_v33 = vld [vmem:[#allocation12 + $0x24] sm:$0xf0] }
 0x109   : > { %1770 = vmatpush.bf16.msra.mxu3 %v3662_v34  ;;  %1798 = vmatpush.bf16.msrb.mxu1 %v3666_v35  ;;  %v4186_v34 = vld [vmem:[#allocation12 + $0xc] sm:$0xf]  ;;  %v3298_v35 = vor.u32 %v4189_v33, %v3297_v32  ;;  %v3478_v32 = vor.u32 %v4229_v23, %v3475_v24  ;;  %v3445_v33 = vld [vmem:[#allocation12 + $0x150] sm:$0xf]  ;;  %v4390_v23 = vld [vmem:[#allocation14 + $0x2e4] sm:$0xf0] }
 0x10a   : > { %1756 = vmatpush.bf16.msra.mxu2 %v3438_v45  ;;  %1784 = vmatpush.bf16.msrb.mxu0 %v3442_v47  ;;  %v3302_v37 = vor.u32 %v4186_v34, %v3299_v36  ;;  %v4225_v34 = vld [vmem:[#allocation12 + $0x16c] sm:$0xf0]  ;;  %v3447_v36 = vld [vmem:[#allocation12 + $0x170] sm:$0xf0] }
 0x10b   : > { %v4197_v24 = vld [vmem:[#allocation12 + $0x6c] sm:$0xf0] }
 0x10d   : > { %1771 = vmatpush.bf16.msra.mxu3 %v3634_v38  ;;  %1799 = vmatpush.bf16.msrb.mxu1 %v3638_v41  ;;  %v750_v38 = vld [vmem:[#allocation11] sm:$0x3] }
 0x10e   : > { %1757 = vmatpush.bf16.msra.mxu2 %v3410_v57  ;;  %1785 = vmatpush.bf16.msrb.mxu0 %v3414_v59  ;;  %v753_v40 = vperm.slane %v750_v38, 1  ;;  %v752_v44 = vperm.slane %v750_v38, 0  ;;  %v3646_v38 = vor.u32 %v4271_v29, %v3643_v30  ;;  %v3705_v30 = vld [vmem:[#allocation12 + $0x398] sm:$0xf] }
 0x111   : > { %1772 = vmatpush.bf16.msra.mxu3 %v3606_v50  ;;  %1800 = vmatpush.bf16.msrb.mxu1 %v3610_v53  ;;  %v3725_v50 = vld [vmem:[#allocation12 + $0x3d0] sm:$0xf] }
 0x112   : > { %1758 = vmatpush.bf16.msra.mxu2 %v3382_v5  ;;  %1786 = vmatpush.bf16.msrb.mxu0 %v3386_v7  ;;  %v4295_v53 = vld [vmem:[#allocation12 + $0x3ec] sm:$0xf0] }
 0x113   : > { %v3726_v59 = vor.u32 %v4295_v53, %v3725_v50  ;;  %v3501_v5 = vld [vmem:[#allocation12 + $0x1d0] sm:$0xf]  ;;  %v4257_v53 = vld [vmem:[#allocation12 + $0x294] sm:$0xf] }
 0x114   : > { %v4239_v7 = vld [vmem:[#allocation12 + $0x1ec] sm:$0xf0] }
 0x115   : > { %1773 = vmatpush.bf16.msra.mxu3 %v3578_v62  ;;  %1801 = vmatpush.bf16.msrb.mxu1 %v3582_v1  ;;  %v4288_v1 = vld [vmem:[#allocation12 + $0x3ac] sm:$0xf0]  ;;  %v3502_v18 = vor.u32 %v4239_v7, %v3501_v5 }
 0x116   : > { %1759 = vmatpush.bf16.msra.mxu2 %v3354_v17  ;;  %1787 = vmatpush.bf16.msrb.mxu0 %v3358_v19  ;;  %v3671_v17 = vld [vmem:[#allocation12 + $0x370] sm:$0xf0]  ;;  %v3506_v19 = vor.u32 %v4236_v8, %v3503_v9  ;;  %v4204_v7 = vld [vmem:[#allocation12 + $0xac] sm:$0xf0] }
 0x117   : > { %v3674_v26 = vor.u32 %v4278_v16, %v3671_v17  ;;  %v4201_v8 = vld [vmem:[#allocation12 + $0x94] sm:$0xf]  ;;  %v3733_v16 = vld [vmem:[#allocation12 + $0x3d8] sm:$0xf] }
 0x118   : > { %v3363_v9 = vld [vmem:[#allocation12 + $0xb0] sm:$0xf0]  ;;  %v4296_v17 = vld [vmem:[#allocation12 + $0x3f4] sm:$0xf0] }
 0x119   : > { %1774 = vmatpush.bf16.msra.mxu3 %v3550_v10  ;;  %1802 = vmatpush.bf16.msrb.mxu1 %v3554_v13  ;;  %v3698_v10 = vor.u32 %v4288_v1, %v3697_v61  ;;  %v4281_v13 = vld [vmem:[#allocation12 + $0x36c] sm:$0xf0]  ;;  %v3734_v29 = vor.u32 %v4296_v17, %v3733_v16  ;;  %v4366_v16 = vld [vmem:[#allocation14 + $0x224] sm:$0xf0]  ;;  %v4219_v17 = vld [vmem:[#allocation12 + $0x134] sm:$0xf0] }
 0x11a   : > { %1760 = vmatpush.bf16.msra.mxu2 %v3326_v28  ;;  %1788 = vmatpush.bf16.msrb.mxu0 %v3330_v31  ;;  %v4274_v28 = vld [vmem:[#allocation12 + $0x32c] sm:$0xf0] }
 0x11b   : > { %v4253_v1 = vld [vmem:[#allocation12 + $0x26c] sm:$0xf0] }
 0x11d   : > { %1775 = vmatpush.bf16.msra.mxu3 %v3522_v22  ;;  %1803 = vmatpush.bf16.msrb.mxu1 %v3526_v25  ;;  %v4232_v22 = vld [vmem:[#allocation12 + $0x1ac] sm:$0xf0]  ;;  %v3670_v25 = vor.u32 %v4281_v13, %v3669_v12 }
 0x11e   : > { %1761 = vmatpush.bf16.msra.mxu2 %v3298_v35  ;;  %1789 = vmatpush.bf16.msrb.mxu0 %v3302_v37  ;;  %v3474_v31 = vor.u32 %v4232_v22, %v3473_v20  ;;  %v4222_v35 = vld [vmem:[#allocation12 + $0x154] sm:$0xf]  ;;  %v3642_v37 = vor.u32 %v4274_v28, %v3641_v27  ;;  %v3529_v12 = vld [vmem:[#allocation12 + $0x210] sm:$0xf] }
 0x11f   : > { %v4246_v13 = vld [vmem:[#allocation12 + $0x22c] sm:$0xf0] }
 0x120   : > { %v3333_v20 = vld [vmem:[#allocation12 + $0x50] sm:$0xf]  ;;  %v3530_v27 = vor.u32 %v4246_v13, %v3529_v12 }
 0x121   : > { %v4097_v22 = vld [vmem:[#allocation14 + $0x2d0] sm:$0xf] }
 0x17c   : > { %v953_v39 = vpop.f32.mrf.mxu0 }
 0x17d   : > { %v967_v41 = vpop.f32.mrf.mxu1  ;;  %v954_v42 = vadd.f32 %v953_v39, %v753_v40  ;;  %v3613_v39 = vld [vmem:[#allocation12 + $0x2d0] sm:$0xf] }
 0x17f   : > { %v968_v47 = vadd.f32 %v967_v41, %v954_v42  ;;  %v4264_v41 = vld [vmem:[#allocation12 + $0x2d4] sm:$0xf] }
 0x180   : > { %v3615_v42 = vld [vmem:[#allocation12 + $0x2f0] sm:$0xf0] }
 0x181   : > { %v973_v56 = vmax.f32 %v968_v47, 0.0  ;;  %v4215_v47 = vld [vmem:[#allocation12 + $0x114] sm:$0xf]  ;;  %v3618_v50 = vor.u32 %v4264_v41, %v3615_v42  ;;  %v3509_v41 = vld [vmem:[#allocation12 + $0x1d8] sm:$0xf] }
 0x182   : > { %v925_v43 = vpop.f32.mrf.mxu2  ;;  %v4240_v42 = vld [vmem:[#allocation12 + $0x1f4] sm:$0xf0] }
 0x183   : > { %v939_v45 = vpop.f32.mrf.mxu3  ;;  %v926_v51 = vadd.f32 %v925_v43, %v752_v44  ;;  %v3446_v43 = vor.u32 %v4225_v34, %v3445_v33  ;;  %v4098_v33 = vor.u32 %v4390_v23, %v4097_v22  ;;  %v3334_v34 = vor.u32 %v4197_v24, %v3333_v20  ;;  %v3593_v22 = vld [vmem:[#allocation12 + $0x298] sm:$0xf] }
 0x184   : > { %v955_v46 = vpop.f32.mrf.mxu0  ;;  %v4261_v23 = vld [vmem:[#allocation12 + $0x2b4] sm:$0xf0] }
 0x185   : > { %v956_v48 = vadd.f32 %v955_v46, %v753_v40  ;;  %v969_v49 = vpop.f32.mrf.mxu1  ;;  %v940_v62 = vadd.f32 %v939_v45, %v926_v51  ;;  %v4267_v40 = vld [vmem:[#allocation12 + $0x2ec] sm:$0xf0] }
 0x186   : > { %v3417_v45 = vld [vmem:[#allocation12 + $0x110] sm:$0xf] }
 0x187   : > { %v970_v52 = vadd.f32 %v969_v49, %v956_v48  ;;  %v972_v14 = vmax.f32 %v940_v62, 0.0  ;;  %v4218_v46 = vld [vmem:[#allocation12 + $0x12c] sm:$0xf0]  ;;  %v3419_v48 = vld [vmem:[#allocation12 + $0x130] sm:$0xf0]  ;;  %v3614_v49 = vor.u32 %v4267_v40, %v3613_v39  ;;  %v3590_v62 = vor.u32 %v4257_v53, %v3587_v54 }
 0x188   : > { %v3585_v51 = vld [vmem:[#allocation12 + $0x290] sm:$0xf]  ;;  %v3418_v55 = vor.u32 %v4218_v46, %v3417_v45  ;;  %v4187_v39 = vld [vmem:[#allocation12 + $0x14] sm:$0xf]  ;;  %v3481_v53 = vld [vmem:[#allocation12 + $0x198] sm:$0xf] }
 0x189   : > { %v975_v57 = vmax.f32 %v970_v52, 0.0  ;;  %v4260_v52 = vld [vmem:[#allocation12 + $0x2ac] sm:$0xf0]  ;;  %v3307_v40 = vld [vmem:[#allocation12 + $0x30] sm:$0xf0] }
 0x18a   : > { %v927_v58 = vpop.f32.mrf.mxu2  ;;  %v3586_v61 = vor.u32 %v4260_v52, %v3585_v51  ;;  %v3510_v51 = vor.u32 %v4240_v42, %v3509_v41  ;;  %v4049_v54 = vld [vmem:[#allocation14 + $0x270] sm:$0xf]  ;;  %v4354_v41 = vld [vmem:[#allocation14 + $0x1c4] sm:$0xf0]  ;;  %v4205_v42 = vld [vmem:[#allocation12 + $0xb4] sm:$0xf0] }
 0x18b   : > { %v5199_v63 = vpack.c.bf16 %v975_v57, %v973_v56  ;;  %v928_v0 = vadd.f32 %v927_v58, %v752_v44  ;;  %v941_v4 = vpop.f32.mrf.mxu3  ;;  %v3450_v44 = vor.u32 %v4222_v35, %v3447_v36  ;;  %v3422_v56 = vor.u32 %v4215_v47, %v3419_v48  ;;  %v3389_v57 = vld [vmem:[#allocation12 + $0xd0] sm:$0xf] }
 0x18c   : > { %v4211_v58 = vld [vmem:[#allocation12 + $0xec] sm:$0xf0]  ;;  %v3310_v48 = vor.u32 %v4187_v39, %v3307_v40  ;;  %v3369_v39 = vld [vmem:[#allocation12 + $0x98] sm:$0xf] }
 0x18d   : > { %v942_v6 = vadd.f32 %v941_v4, %v928_v0  ;;  %1720 = vmatmul.bf16.vlgmr.msrb.gmra.mxu3 %v5199_v63  ;;  %1748 = vmatmul.bf16.vlgmr.msra.gmra.mxu1 %v5199_v63  ;;  %v3557_v0 = vld [vmem:[#allocation12 + $0x250] sm:$0xf]  ;;  %v3390_v4 = vor.u32 %v4211_v58, %v3389_v57  ;;  %v3881_v57 = vld [vmem:[#allocation14 + $0x120] sm:$0xf]  ;;  %v4336_v58 = vld [vmem:[#allocation14 + $0x134] sm:$0xf0] }
 0x18e   : > { %1824 = vmatpush.bf16.msrb.mxu3 %v3726_v59  ;;  %1852 = vmatpush.bf16.msra.mxu1 %v3730_v60  ;;  %v4208_v59 = vld [vmem:[#allocation12 + $0xd4] sm:$0xf]  ;;  %v4190_v36 = vld [vmem:[#allocation12 + $0x2c] sm:$0xf0] }
 0x18f   : > { %v974_v15 = vmax.f32 %v942_v6, 0.0  ;;  %v3391_v60 = vld [vmem:[#allocation12 + $0xf0] sm:$0xf0]  ;;  %v3361_v6 = vld [vmem:[#allocation12 + $0x90] sm:$0xf] }
 0x190   : > { %v3394_v5 = vor.u32 %v4208_v59, %v3391_v60  ;;  %v3649_v60 = vld [vmem:[#allocation12 + $0x318] sm:$0xf]  ;;  %v3953_v40 = vld [vmem:[#allocation14 + $0x1b0] sm:$0xf] }
 0x191   : > { %v5203_v21 = vpack.c.bf16 %v974_v15, %v972_v14  ;;  %v4243_v14 = vld [vmem:[#allocation12 + $0x214] sm:$0xf] }
 0x192   : > { %1825 = vmatpush.bf16.msrb.mxu3 %v3698_v10  ;;  %1853 = vmatpush.bf16.msra.mxu1 %v3702_v11  ;;  %v3558_v10 = vor.u32 %v4253_v1, %v3557_v0  ;;  %v3562_v11 = vor.u32 %v4250_v2, %v3559_v3  ;;  %v3531_v15 = vld [vmem:[#allocation12 + $0x230] sm:$0xf0]  ;;  %v3882_v1 = vor.u32 %v4336_v58, %v3881_v57  ;;  %v3453_v2 = vld [vmem:[#allocation12 + $0x158] sm:$0xf]  ;;  %v4025_v3 = vld [vmem:[#allocation14 + $0x240] sm:$0xf] }
 0x193   : > { %1706 = vmatmul.bf16.vlgmr.msrb.gmra.mxu2 %v5203_v21  ;;  %1734 = vmatmul.bf16.vlgmr.msra.gmra.mxu0 %v5203_v21  ;;  %v3534_v28 = vor.u32 %v4243_v14, %v3531_v15  ;;  %v3425_v14 = vld [vmem:[#allocation12 + $0x118] sm:$0xf]  ;;  %v4001_v15 = vld [vmem:[#allocation14 + $0x210] sm:$0xf]  ;;  %v4306_v58 = vld [vmem:[#allocation14 + $0x44] sm:$0xf0] }
 0x194   : > { %1810 = vmatpush.bf16.msrb.mxu2 %v3502_v18  ;;  %1838 = vmatpush.bf16.msra.mxu0 %v3506_v19  ;;  %v3362_v18 = vor.u32 %v4204_v7, %v3361_v6  ;;  %v3366_v19 = vor.u32 %v4201_v8, %v3363_v9  ;;  %v3857_v6 = vld [vmem:[#allocation14 + $0xf0] sm:$0xf]  ;;  %v4330_v7 = vld [vmem:[#allocation14 + $0x104] sm:$0xf0]  ;;  %v3621_v9 = vld [vmem:[#allocation12 + $0x2d8] sm:$0xf]  ;;  %v4002_v24 = vor.u32 %v4366_v16, %v4001_v15 }
 0x195   : > { %v3858_v13 = vor.u32 %v4330_v7, %v3857_v6  ;;  %v3761_v57 = vld [vmem:[#allocation14 + $0x30] sm:$0xf]  ;;  %v4075_v6 = vld [vmem:[#allocation14 + $0x2b8] sm:$0xf0]  ;;  %v3313_v7 = vld [vmem:[#allocation12 + $0x18] sm:$0xf] }
 0x196   : > { %1826 = vmatpush.bf16.msrb.mxu3 %v3670_v25  ;;  %1854 = vmatpush.bf16.msra.mxu1 %v3674_v26  ;;  %v4194_v25 = vld [vmem:[#allocation12 + $0x54] sm:$0xf]  ;;  %v4343_v15 = vld [vmem:[#allocation14 + $0x16c] sm:$0xf0] }
 0x197   : > { %v3335_v26 = vld [vmem:[#allocation12 + $0x70] sm:$0xf0] }
 0x198   : > { %1811 = vmatpush.bf16.msrb.mxu2 %v3474_v31  ;;  %1839 = vmatpush.bf16.msra.mxu0 %v3478_v32  ;;  %v4289_v31 = vld [vmem:[#allocation12 + $0x3b4] sm:$0xf0]  ;;  %v3305_v32 = vld [vmem:[#allocation12 + $0x10] sm:$0xf]  ;;  %v3338_v35 = vor.u32 %v4194_v25, %v3335_v26  ;;  %v3426_v25 = vor.u32 %v4219_v17, %v3425_v14 }
 0x199   : > { %v3706_v45 = vor.u32 %v4289_v31, %v3705_v30  ;;  %v3306_v47 = vor.u32 %v4190_v36, %v3305_v32  ;;  %v4212_v30 = vld [vmem:[#allocation12 + $0xf4] sm:$0xf0]  ;;  %v3809_v31 = vld [vmem:[#allocation14 + $0x90] sm:$0xf]  ;;  %v4318_v32 = vld [vmem:[#allocation14 + $0xa4] sm:$0xf0] }
 0x19a   : > { %1827 = vmatpush.bf16.msrb.mxu3 %v3642_v37  ;;  %1855 = vmatpush.bf16.msra.mxu1 %v3646_v38  ;;  %v4073_v37 = vld [vmem:[#allocation14 + $0x2a0] sm:$0xf]  ;;  %v4384_v38 = vld [vmem:[#allocation14 + $0x2b4] sm:$0xf0] }
 0x19b   : > { %v4074_v46 = vor.u32 %v4384_v38, %v4073_v37  ;;  %v3810_v38 = vor.u32 %v4318_v32, %v3809_v31  ;;  %v3913_v14 = vld [vmem:[#allocation14 + $0x158] sm:$0xf]  ;;  %v3889_v31 = vld [vmem:[#allocation14 + $0x128] sm:$0xf]  ;;  %v4337_v32 = vld [vmem:[#allocation14 + $0x13c] sm:$0xf0] }
 0x19c   : > { %1812 = vmatpush.bf16.msrb.mxu2 %v3446_v43  ;;  %1840 = vmatpush.bf16.msra.mxu0 %v3450_v44  ;;  %v3905_v43 = vld [vmem:[#allocation14 + $0x150] sm:$0xf]  ;;  %v4342_v44 = vld [vmem:[#allocation14 + $0x164] sm:$0xf0] }
 0x19d   : > { %1776 = vmatmul.bf16.vlgmr.msra.gmra.mxu3 %v5199_v63  ;;  %1804 = vmatmul.bf16.vlgmr.msrb.gmra.mxu1 %v5199_v63  ;;  %v3906_v52 = vor.u32 %v4342_v44, %v3905_v43  ;;  %v3785_v43 = vld [vmem:[#allocation14 + $0x60] sm:$0xf]  ;;  %v4312_v44 = vld [vmem:[#allocation14 + $0x74] sm:$0xf0] }
 0x19e   : > { %1828 = vmatpush.bf16.msrb.mxu3 %v3614_v49  ;;  %1856 = vmatpush.bf16.msra.mxu1 %v3618_v50  ;;  %v3677_v49 = vld [vmem:[#allocation12 + $0x358] sm:$0xf] }
 0x19f   : > { %v4282_v50 = vld [vmem:[#allocation12 + $0x374] sm:$0xf0] }
 0x1a0   : > { %1813 = vmatpush.bf16.msrb.mxu2 %v3418_v55  ;;  %1841 = vmatpush.bf16.msra.mxu0 %v3422_v56  ;;  %v4378_v55 = vld [vmem:[#allocation14 + $0x284] sm:$0xf0]  ;;  %v4233_v56 = vld [vmem:[#allocation12 + $0x1b4] sm:$0xf0]  ;;  %v3678_v59 = vor.u32 %v4282_v50, %v3677_v49  ;;  %v4099_v49 = vld [vmem:[#allocation14 + $0x2e8] sm:$0xf0]  ;;  %v3954_v50 = vor.u32 %v4354_v41, %v3953_v40 }
 0x1a1   : > { %v3482_v0 = vor.u32 %v4233_v56, %v3481_v53  ;;  %v3341_v53 = vld [vmem:[#allocation12 + $0x58] sm:$0xf]  ;;  %v4027_v40 = vld [vmem:[#allocation14 + $0x258] sm:$0xf0]  ;;  %v4327_v41 = vld [vmem:[#allocation14 + $0xf4] sm:$0xf] }
 0x1a2   : > { %1829 = vmatpush.bf16.msrb.mxu3 %v3586_v61  ;;  %1857 = vmatpush.bf16.msra.mxu1 %v3590_v62  ;;  %v4275_v61 = vld [vmem:[#allocation12 + $0x334] sm:$0xf0]  ;;  %v4050_v62 = vor.u32 %v4378_v55, %v4049_v54  ;;  %v3929_v54 = vld [vmem:[#allocation14 + $0x180] sm:$0xf] }
 0x1a3   : > { %1762 = vmatmul.bf16.vlgmr.msra.gmra.mxu2 %v5203_v21  ;;  %1790 = vmatmul.bf16.vlgmr.msrb.gmra.mxu0 %v5203_v21  ;;  %v3650_v8 = vor.u32 %v4275_v61, %v3649_v60  ;;  %v4348_v55 = vld [vmem:[#allocation14 + $0x194] sm:$0xf0]  ;;  %v4391_v61 = vld [vmem:[#allocation14 + $0x2ec] sm:$0xf0] }
 0x1a4   : > { %1814 = vmatpush.bf16.msrb.mxu2 %v3390_v4  ;;  %1842 = vmatpush.bf16.msra.mxu0 %v3394_v5  ;;  %v4372_v4 = vld [vmem:[#allocation14 + $0x254] sm:$0xf0] }
 0x1a5   : > { %v4226_v5 = vld [vmem:[#allocation12 + $0x174] sm:$0xf0] }
 0x1a6   : > { %1830 = vmatpush.bf16.msrb.mxu3 %v3558_v10  ;;  %1858 = vmatpush.bf16.msra.mxu1 %v3562_v11  ;;  %v4268_v10 = vld [vmem:[#allocation12 + $0x2f4] sm:$0xf0]  ;;  %v4026_v11 = vor.u32 %v4372_v4, %v4025_v3  ;;  %v3454_v12 = vor.u32 %v4226_v5, %v3453_v2  ;;  %v571_v2 = vld [vmem:[#allocation2] sm:$0xff]  ;;  %v573_v3 = vld [vmem:[#allocation2 + $0x8] sm:$0xff]  ;;  %v3762_v5 = vor.u32 %v4306_v58, %v3761_v57 }
 0x1a7   : > { %v3622_v20 = vor.u32 %v4268_v10, %v3621_v9  ;;  %v4198_v56 = vld [vmem:[#allocation12 + $0x74] sm:$0xf0]  ;;  %v3737_v9 = vld [vmem:[#allocation14] sm:$0xf]  ;;  %v5215_v16 = vpack.c.bf16 %v573_v3, %v571_v2  ;;  %v3811_v2 = vld [vmem:[#allocation14 + $0xa8] sm:$0xf0] }
 0x1a8   : > { %1815 = vmatpush.bf16.msrb.mxu2 %v3362_v18  ;;  %1843 = vmatpush.bf16.msra.mxu0 %v3366_v19  ;;  %v3833_v18 = vld [vmem:[#allocation14 + $0xc0] sm:$0xf]  ;;  %v4324_v19 = vld [vmem:[#allocation14 + $0xd4] sm:$0xf0]  ;;  %v3342_v4 = vor.u32 %v4198_v56, %v3341_v53  ;;  %v4321_v53 = vld [vmem:[#allocation14 + $0xc4] sm:$0xf] }
 0x1a9   : > { %v3834_v26 = vor.u32 %v4324_v19, %v3833_v18  ;;  %v4105_v60 = vld [vmem:[#allocation14 + $0x2d8] sm:$0xf]  ;;  %v4081_v18 = vld [vmem:[#allocation14 + $0x2a8] sm:$0xf]  ;;  %v4385_v19 = vld [vmem:[#allocation14 + $0x2bc] sm:$0xf0] }
 0x1aa   : > { %1831 = vmatpush.bf16.msrb.mxu3 %v3530_v27  ;;  %1859 = vmatpush.bf16.msra.mxu1 %v3534_v28  ;;  %v3397_v27 = vld [vmem:[#allocation12 + $0xd8] sm:$0xf]  ;;  %v3977_v28 = vld [vmem:[#allocation14 + $0x1e0] sm:$0xf] }
 0x1ab   : > { %v3398_v37 = vor.u32 %v4212_v30, %v3397_v27  ;;  %v4300_v10 = vld [vmem:[#allocation14 + $0x14] sm:$0xf0]  ;;  %v4375_v27 = vld [vmem:[#allocation14 + $0x274] sm:$0xf]  ;;  %v3883_v30 = vld [vmem:[#allocation14 + $0x138] sm:$0xf0] }
 0x1ac   : > { %1816 = vmatpush.bf16.msrb.mxu2 %v3334_v34  ;;  %1844 = vmatpush.bf16.msra.mxu0 %v3338_v35  ;;  %v3565_v34 = vld [vmem:[#allocation12 + $0x258] sm:$0xf]  ;;  %v4325_v56 = vld [vmem:[#allocation14 + $0xdc] sm:$0xf0] }
 0x1ad   : > { %1832 = vmatmul.bf16.vlgmr.msrb.gmra.mxu3 %v5199_v63  ;;  %1860 = vmatmul.bf16.vlgmr.msra.gmra.mxu1 %v5199_v63  ;;  %v4254_v35 = vld [vmem:[#allocation12 + $0x274] sm:$0xf0] }
 0x1ae   : > { %1880 = vmatpush.bf16.msra.mxu3 %v3734_v29  ;;  %2500 = vmatpush.bf16.msrb.mxu1 %v4098_v33  ;;  %v4360_v29 = vld [vmem:[#allocation14 + $0x1f4] sm:$0xf0]  ;;  %v3594_v33 = vor.u32 %v4261_v23, %v3593_v22  ;;  %v3738_v22 = vor.u32 %v4300_v10, %v3737_v9  ;;  %v570_v23 = vld [vmem:[#allocation2 + $0x10] sm:$0xff] }
 0x1af   : > { %v3978_v36 = vor.u32 %v4360_v29, %v3977_v28  ;;  %v4051_v28 = vld [vmem:[#allocation14 + $0x288] sm:$0xf0]  ;;  %v4333_v29 = vld [vmem:[#allocation14 + $0x124] sm:$0xf]  ;;  %v4009_v58 = vld [vmem:[#allocation14 + $0x218] sm:$0xf] }
 0x1b0   : > { %1817 = vmatpush.bf16.msrb.mxu2 %v3306_v47  ;;  %1845 = vmatpush.bf16.msra.mxu0 %v3310_v48  ;;  %v4247_v47 = vld [vmem:[#allocation12 + $0x234] sm:$0xf0]  ;;  %v4387_v48 = vld [vmem:[#allocation14 + $0x2d4] sm:$0xf] }
 0x1b1   : > { %v3817_v3 = vld [vmem:[#allocation14 + $0x98] sm:$0xf] }
 0x1b2   : > { %1881 = vmatpush.bf16.msra.mxu3 %v3706_v45  ;;  %2501 = vmatpush.bf16.msrb.mxu1 %v4074_v46  ;;  %v3566_v45 = vor.u32 %v4254_v35, %v3565_v34  ;;  %v3537_v46 = vld [vmem:[#allocation12 + $0x218] sm:$0xf] }
 0x1b3   : > { %1818 = vmatmul.bf16.vlgmr.msrb.gmra.mxu2 %v5203_v21  ;;  %1846 = vmatmul.bf16.vlgmr.msra.gmra.mxu0 %v5203_v21  ;;  %v4057_v35 = vld [vmem:[#allocation14 + $0x278] sm:$0xf] }
 0x1b4   : > { %1866 = vmatpush.bf16.msra.mxu2 %v3510_v51  ;;  %2486 = vmatpush.bf16.msrb.mxu0 %v3906_v52  ;;  %v3370_v51 = vor.u32 %v4205_v42, %v3369_v39  ;;  %v3786_v52 = vor.u32 %v4312_v44, %v3785_v43  ;;  %v4369_v39 = vld [vmem:[#allocation14 + $0x244] sm:$0xf]  ;;  %v3859_v42 = vld [vmem:[#allocation14 + $0x108] sm:$0xf0]  ;;  %v3865_v43 = vld [vmem:[#allocation14 + $0xf8] sm:$0xf] }
 0x1b5   : > { %v4331_v44 = vld [vmem:[#allocation14 + $0x10c] sm:$0xf0] }
 0x1b6   : > { %1882 = vmatpush.bf16.msra.mxu3 %v3678_v59  ;;  %2502 = vmatpush.bf16.msrb.mxu1 %v4050_v62  ;;  %v3538_v59 = vor.u32 %v4247_v47, %v3537_v46  ;;  %v4102_v62 = vor.u32 %v4387_v48, %v4099_v49  ;;  %v4033_v46 = vld [vmem:[#allocation14 + $0x248] sm:$0xf]  ;;  %v4373_v47 = vld [vmem:[#allocation14 + $0x25c] sm:$0xf0]  ;;  %v4030_v48 = vor.u32 %v4369_v39, %v4027_v40 }
 0x1b7   : > { %v3862_v49 = vor.u32 %v4327_v41, %v3859_v42  ;;  %v4034_v57 = vor.u32 %v4373_v47, %v4033_v46  ;;  %v4382_v41 = vld [vmem:[#allocation14 + $0x2ac] sm:$0xf]  ;;  %v4083_v42 = vld [vmem:[#allocation14 + $0x2c0] sm:$0xf0]  ;;  %v3745_v46 = vld [vmem:[#allocation14 + $0x8] sm:$0xf] }
 0x1b8   : > { %1867 = vmatpush.bf16.msra.mxu2 %v3482_v0  ;;  %2487 = vmatpush.bf16.msrb.mxu0 %v3882_v1  ;;  %v4381_v0 = vld [vmem:[#allocation14 + $0x2a4] sm:$0xf]  ;;  %v3930_v1 = vor.u32 %v4348_v55, %v3929_v54  ;;  %v3835_v54 = vld [vmem:[#allocation14 + $0xd8] sm:$0xf0]  ;;  %v3841_v55 = vld [vmem:[#allocation14 + $0xc8] sm:$0xf] }
 0x1b9   : > { %v4078_v17 = vor.u32 %v4381_v0, %v4075_v6  ;;  %v3979_v0 = vld [vmem:[#allocation14 + $0x1f8] sm:$0xf0]  ;;  %v3985_v6 = vld [vmem:[#allocation14 + $0x1e8] sm:$0xf] }
 0x1ba   : > { %1883 = vmatpush.bf16.msra.mxu3 %v3650_v8  ;;  %2503 = vmatpush.bf16.msrb.mxu1 %v4026_v11  ;;  %v4191_v8 = vld [vmem:[#allocation12 + $0x34] sm:$0xf0]  ;;  %v4339_v11 = vld [vmem:[#allocation14 + $0x154] sm:$0xf] }
 0x1bc   : > { %1868 = vmatpush.bf16.msra.mxu2 %v3454_v12  ;;  %2488 = vmatpush.bf16.msrb.mxu0 %v3858_v13  ;;  %v4106_v12 = vor.u32 %v4391_v61, %v4105_v60  ;;  %v3907_v13 = vld [vmem:[#allocation14 + $0x168] sm:$0xf0]  ;;  %v3838_v60 = vor.u32 %v4321_v53, %v3835_v54  ;;  %v3842_v61 = vor.u32 %v4325_v56, %v3841_v55  ;;  %v4344_v53 = vld [vmem:[#allocation14 + $0x174] sm:$0xf0]  ;;  %v4089_v56 = vld [vmem:[#allocation14 + $0x2b0] sm:$0xf] }
 0x1bd   : > { %v4086_v54 = vor.u32 %v4382_v41, %v4083_v42 }
 0x1be   : > { %1884 = vmatpush.bf16.msra.mxu3 %v3622_v20  ;;  %2504 = vmatpush.bf16.msrb.mxu1 %v4002_v24  ;;  %v3314_v20 = vor.u32 %v4191_v8, %v3313_v7  ;;  %v572_v24 = vld [vmem:[#allocation2 + $0x18] sm:$0xff]  ;;  %v4361_v7 = vld [vmem:[#allocation14 + $0x1fc] sm:$0xf0] }
 0x1bf   : > { %v5219_v34 = vpack.c.bf16 %v572_v24, %v570_v23  ;;  %v4345_v23 = vld [vmem:[#allocation14 + $0x184] sm:$0xf] }
 0x1c0   : > { %1869 = vmatpush.bf16.msra.mxu2 %v3426_v25  ;;  %2489 = vmatpush.bf16.msrb.mxu0 %v3834_v26  ;;  %v3910_v25 = vor.u32 %v4339_v11, %v3907_v13  ;;  %v3914_v26 = vor.u32 %v4343_v15, %v3913_v14  ;;  %v4351_v11 = vld [vmem:[#allocation14 + $0x1b4] sm:$0xf]  ;;  %v4309_v13 = vld [vmem:[#allocation14 + $0x64] sm:$0xf]  ;;  %v3787_v14 = vld [vmem:[#allocation14 + $0x78] sm:$0xf0] }
 0x1c1   : > { %v3793_v15 = vld [vmem:[#allocation14 + $0x68] sm:$0xf]  ;;  %v3790_v24 = vor.u32 %v4309_v13, %v3787_v14  ;;  %v3873_v13 = vld [vmem:[#allocation14 + $0x100] sm:$0xf]  ;;  %v4332_v14 = vld [vmem:[#allocation14 + $0x114] sm:$0xf0] }
 0x1c2   : > { %1885 = vmatpush.bf16.msra.mxu3 %v3594_v33  ;;  %2505 = vmatpush.bf16.msrb.mxu1 %v3978_v36  ;;  %v4082_v33 = vor.u32 %v4385_v19, %v4081_v18  ;;  %v4379_v36 = vld [vmem:[#allocation14 + $0x28c] sm:$0xf0]  ;;  %v3986_v18 = vor.u32 %v4361_v7, %v3985_v6  ;;  %v3961_v19 = vld [vmem:[#allocation14 + $0x1b8] sm:$0xf] }
 0x1c3   : > { %v4380_v6 = vld [vmem:[#allocation14 + $0x294] sm:$0xf0] }
 0x1c4   : > { %1870 = vmatpush.bf16.msra.mxu2 %v3398_v37  ;;  %2490 = vmatpush.bf16.msrb.mxu0 %v3810_v38  ;;  %v3886_v37 = vor.u32 %v4333_v29, %v3883_v30  ;;  %v3890_v38 = vor.u32 %v4337_v32, %v3889_v31  ;;  %v4303_v29 = vld [vmem:[#allocation14 + $0x34] sm:$0xf]  ;;  %v3763_v30 = vld [vmem:[#allocation14 + $0x48] sm:$0xf0]  ;;  %v3769_v31 = vld [vmem:[#allocation14 + $0x38] sm:$0xf] }
 0x1c5   : > { %v3766_v40 = vor.u32 %v4303_v29, %v3763_v30 }
 0x1c6   : > { %1886 = vmatpush.bf16.msra.mxu3 %v3566_v45  ;;  %2506 = vmatpush.bf16.msrb.mxu1 %v3954_v50  ;;  %v4058_v45 = vor.u32 %v4379_v36, %v4057_v35  ;;  %v3866_v50 = vor.u32 %v4331_v44, %v3865_v43  ;;  %v3937_v35 = vld [vmem:[#allocation14 + $0x188] sm:$0xf]  ;;  %v4349_v36 = vld [vmem:[#allocation14 + $0x19c] sm:$0xf0]  ;;  %v4297_v44 = vld [vmem:[#allocation14 + $0x4] sm:$0xf] }
 0x1c7   : > { %v3938_v47 = vor.u32 %v4349_v36, %v3937_v35  ;;  %v4358_v35 = vld [vmem:[#allocation14 + $0x1ec] sm:$0xf]  ;;  %v3987_v36 = vld [vmem:[#allocation14 + $0x200] sm:$0xf0] }
 0x1c8   : > { %1871 = vmatpush.bf16.msra.mxu2 %v3370_v51  ;;  %2491 = vmatpush.bf16.msrb.mxu0 %v3786_v52  ;;  %v4363_v51 = vld [vmem:[#allocation14 + $0x214] sm:$0xf]  ;;  %v4003_v52 = vld [vmem:[#allocation14 + $0x228] sm:$0xf0]  ;;  %v3990_v42 = vor.u32 %v4358_v35, %v3987_v36  ;;  %v3875_v35 = vld [vmem:[#allocation14 + $0x118] sm:$0xf0] }
 0x1ca   : > { %1887 = vmatpush.bf16.msra.mxu3 %v3538_v59  ;;  %2507 = vmatpush.bf16.msrb.mxu1 %v3930_v1  ;;  %v4006_v59 = vor.u32 %v4363_v51, %v4003_v52  ;;  %v4315_v1 = vld [vmem:[#allocation14 + $0x94] sm:$0xf]  ;;  %v3921_v52 = vld [vmem:[#allocation14 + $0x160] sm:$0xf] }
 0x1cb   : > { %v3814_v9 = vor.u32 %v4315_v1, %v3811_v2  ;;  %v3897_v1 = vld [vmem:[#allocation14 + $0x130] sm:$0xf]  ;;  %v4338_v2 = vld [vmem:[#allocation14 + $0x144] sm:$0xf0] }
 0x1cc   : > { %1872 = vmatpush.bf16.msra.mxu2 %v3342_v4  ;;  %2492 = vmatpush.bf16.msrb.mxu0 %v3762_v5  ;;  %v4319_v4 = vld [vmem:[#allocation14 + $0xac] sm:$0xf0] }
 0x1cd   : > { %1888 = vmatmul.bf16.vlgmr.msra.gmra.mxu3 %v5199_v63  ;;  %2508 = vmatmul.bf16.vlgmr.msrb.gmra.mxu1 %v5215_v16  ;;  %v4054_v63 = vor.u32 %v4375_v27, %v4051_v28  ;;  %v3818_v10 = vor.u32 %v4319_v4, %v3817_v3  ;;  %v4388_v27 = vld [vmem:[#allocation14 + $0x2dc] sm:$0xf]  ;;  %v4107_v28 = vld [vmem:[#allocation14 + $0x2f0] sm:$0xf0] }
 0x1ce   : > { %2528 = vmatpush.bf16.msrb.mxu3 %v4102_v62  ;;  %2556 = vmatpush.bf16.msra.mxu1 %v4106_v12  ;;  %v4357_v62 = vld [vmem:[#allocation14 + $0x1e4] sm:$0xf]  ;;  %v3955_v12 = vld [vmem:[#allocation14 + $0x1c8] sm:$0xf0]  ;;  %v4110_v39 = vor.u32 %v4388_v27, %v4107_v28  ;;  %v3849_v27 = vld [vmem:[#allocation14 + $0xd0] sm:$0xf] }
 0x1cf   : > { %v3982_v8 = vor.u32 %v4357_v62, %v3979_v0  ;;  %v4334_v62 = vld [vmem:[#allocation14 + $0x12c] sm:$0xf]  ;;  %v3891_v0 = vld [vmem:[#allocation14 + $0x140] sm:$0xf0]  ;;  %v4326_v28 = vld [vmem:[#allocation14 + $0xe4] sm:$0xf0] }
 0x1d0   : > { %1873 = vmatpush.bf16.msra.mxu2 %v3314_v20  ;;  %2493 = vmatpush.bf16.msrb.mxu0 %v3738_v22  ;;  %v4355_v20 = vld [vmem:[#allocation14 + $0x1cc] sm:$0xf0]  ;;  %v3958_v22 = vor.u32 %v4351_v11, %v3955_v12  ;;  %v3894_v7 = vor.u32 %v4334_v62, %v3891_v0  ;;  %v4328_v11 = vld [vmem:[#allocation14 + $0xfc] sm:$0xf]  ;;  %v3867_v12 = vld [vmem:[#allocation14 + $0x110] sm:$0xf0] }
 0x1d1   : > { %v3962_v32 = vor.u32 %v4355_v20, %v3961_v19  ;;  %v4374_v19 = vld [vmem:[#allocation14 + $0x264] sm:$0xf0]  ;;  %v3870_v20 = vor.u32 %v4328_v11, %v3867_v12  ;;  %v4304_v62 = vld [vmem:[#allocation14 + $0x3c] sm:$0xf]  ;;  %v3771_v0 = vld [vmem:[#allocation14 + $0x50] sm:$0xf0] }
 0x1d2   : > { %2529 = vmatpush.bf16.msrb.mxu3 %v4078_v17  ;;  %2557 = vmatpush.bf16.msra.mxu1 %v4082_v33  ;;  %v4313_v17 = vld [vmem:[#allocation14 + $0x7c] sm:$0xf0]  ;;  %v4307_v33 = vld [vmem:[#allocation14 + $0x4c] sm:$0xf0]  ;;  %v4298_v12 = vld [vmem:[#allocation14 + $0xc] sm:$0xf] }
 0x1d3   : > { %1874 = vmatmul.bf16.vlgmr.msra.gmra.mxu2 %v5203_v21  ;;  %2494 = vmatmul.bf16.vlgmr.msrb.gmra.mxu0 %v5219_v34  ;;  %v4367_v21 = vld [vmem:[#allocation14 + $0x22c] sm:$0xf0]  ;;  %v3770_v43 = vor.u32 %v4307_v33, %v3769_v31  ;;  %v4017_v31 = vld [vmem:[#allocation14 + $0x220] sm:$0xf] }
 0x1d4   : > { %2514 = vmatpush.bf16.msrb.mxu2 %v3910_v25  ;;  %2542 = vmatpush.bf16.msra.mxu0 %v3914_v26  ;;  %v4010_v5 = vor.u32 %v4367_v21, %v4009_v58  ;;  %v3794_v25 = vor.u32 %v4313_v17, %v3793_v15  ;;  %v3931_v26 = vld [vmem:[#allocation14 + $0x198] sm:$0xf0] }
 0x1d6   : > { %2530 = vmatpush.bf16.msrb.mxu3 %v4054_v63  ;;  %2558 = vmatpush.bf16.msra.mxu1 %v4058_v45  ;;  %v3934_v63 = vor.u32 %v4345_v23, %v3931_v26  ;;  %v3739_v45 = vld [vmem:[#allocation14 + $0x18] sm:$0xf0]  ;;  %v4011_v23 = vld [vmem:[#allocation14 + $0x230] sm:$0xf0]  ;;  %v3843_v26 = vld [vmem:[#allocation14 + $0xe0] sm:$0xf0] }
 0x1d7   : > { %v3742_v55 = vor.u32 %v4297_v44, %v3739_v45  ;;  %v4362_v44 = vld [vmem:[#allocation14 + $0x204] sm:$0xf0] }
 0x1d8   : > { %2515 = vmatpush.bf16.msrb.mxu2 %v3886_v37  ;;  %2543 = vmatpush.bf16.msra.mxu0 %v3890_v38  ;;  %v4113_v37 = vld [vmem:[#allocation14 + $0x2e0] sm:$0xf]  ;;  %v4392_v38 = vld [vmem:[#allocation14 + $0x2f4] sm:$0xf0] }
 0x1d9   : > { %v4114_v51 = vor.u32 %v4392_v38, %v4113_v37  ;;  %v4316_v37 = vld [vmem:[#allocation14 + $0x9c] sm:$0xf]  ;;  %v3819_v38 = vld [vmem:[#allocation14 + $0xb0] sm:$0xf0] }
 0x1da   : > { %2531 = vmatpush.bf16.msrb.mxu3 %v4030_v48  ;;  %2559 = vmatpush.bf16.msra.mxu1 %v4034_v57  ;;  %v4301_v48 = vld [vmem:[#allocation14 + $0x1c] sm:$0xf0]  ;;  %v4386_v57 = vld [vmem:[#allocation14 + $0x2c4] sm:$0xf0]  ;;  %v3822_v45 = vor.u32 %v4316_v37, %v3819_v38 }
 0x1db   : > { %v3746_v58 = vor.u32 %v4301_v48, %v3745_v46  ;;  %v4090_v3 = vor.u32 %v4386_v57, %v4089_v56  ;;  %v4352_v46 = vld [vmem:[#allocation14 + $0x1bc] sm:$0xf]  ;;  %v4356_v56 = vld [vmem:[#allocation14 + $0x1d4] sm:$0xf0] }
 0x1dc   : > { %2516 = vmatpush.bf16.msrb.mxu2 %v3862_v49  ;;  %2544 = vmatpush.bf16.msra.mxu0 %v3866_v50  ;;  %v4340_v49 = vld [vmem:[#allocation14 + $0x15c] sm:$0xf]  ;;  %v3915_v50 = vld [vmem:[#allocation14 + $0x170] sm:$0xf0] }
 0x1dd   : > { %v3918_v21 = vor.u32 %v4340_v49, %v3915_v50  ;;  %v4310_v49 = vld [vmem:[#allocation14 + $0x6c] sm:$0xf]  ;;  %v3795_v50 = vld [vmem:[#allocation14 + $0x80] sm:$0xf0] }
 0x1de   : > { %2532 = vmatpush.bf16.msrb.mxu3 %v4006_v59  ;;  %2560 = vmatpush.bf16.msra.mxu1 %v4010_v5  ;;  %v4376_v59 = vld [vmem:[#allocation14 + $0x27c] sm:$0xf]  ;;  %v4065_v5 = vld [vmem:[#allocation14 + $0x280] sm:$0xf]  ;;  %v3798_v57 = vor.u32 %v4310_v49, %v3795_v50  ;;  %v3995_v49 = vld [vmem:[#allocation14 + $0x208] sm:$0xf0] }
 0x1df   : > { %v4066_v15 = vor.u32 %v4380_v6, %v4065_v5  ;;  %v3945_v5 = vld [vmem:[#allocation14 + $0x190] sm:$0xf]  ;;  %v4350_v6 = vld [vmem:[#allocation14 + $0x1a4] sm:$0xf0] }
 0x1e0   : > { %2517 = vmatpush.bf16.msrb.mxu2 %v3838_v60  ;;  %2545 = vmatpush.bf16.msra.mxu0 %v3842_v61  ;;  %v4059_v60 = vld [vmem:[#allocation14 + $0x290] sm:$0xf0]  ;;  %v3922_v61 = vor.u32 %v4344_v53, %v3921_v52  ;;  %v4314_v52 = vld [vmem:[#allocation14 + $0x84] sm:$0xf0] }
 0x1e1   : > { %v4062_v4 = vor.u32 %v4376_v59, %v4059_v60  ;;  %v4389_v59 = vld [vmem:[#allocation14 + $0x2e4] sm:$0xf] }
 0x1e2   : > { %2533 = vmatpush.bf16.msrb.mxu3 %v3982_v8  ;;  %2561 = vmatpush.bf16.msra.mxu1 %v3986_v18  ;;  %v4370_v8 = vld [vmem:[#allocation14 + $0x24c] sm:$0xf]  ;;  %v4041_v18 = vld [vmem:[#allocation14 + $0x250] sm:$0xf] }
 0x1e3   : > { %v4042_v29 = vor.u32 %v4374_v19, %v4041_v18  ;;  %v3923_v18 = vld [vmem:[#allocation14 + $0x178] sm:$0xf0]  ;;  %v3946_v19 = vor.u32 %v4350_v6, %v3945_v5  ;;  %v3947_v5 = vld [vmem:[#allocation14 + $0x1a8] sm:$0xf0] }
 0x1e4   : > { %2518 = vmatpush.bf16.msrb.mxu2 %v3814_v9  ;;  %2546 = vmatpush.bf16.msra.mxu0 %v3818_v10  ;;  %v4035_v9 = vld [vmem:[#allocation14 + $0x260] sm:$0xf0]  ;;  %v3898_v10 = vor.u32 %v4338_v2, %v3897_v1  ;;  %v3777_v1 = vld [vmem:[#allocation14 + $0x40] sm:$0xf]  ;;  %v4308_v2 = vld [vmem:[#allocation14 + $0x54] sm:$0xf0] }
 0x1e5   : > { %v4038_v17 = vor.u32 %v4370_v8, %v4035_v9  ;;  %v3774_v8 = vor.u32 %v4304_v62, %v3771_v0  ;;  %v4383_v9 = vld [vmem:[#allocation14 + $0x2b4] sm:$0xf]  ;;  %v3778_v11 = vor.u32 %v4308_v2, %v3777_v1 }
 0x1e6   : > { %2534 = vmatpush.bf16.msrb.mxu3 %v3958_v22  ;;  %2562 = vmatpush.bf16.msra.mxu1 %v3962_v32  ;;  %v4364_v22 = vld [vmem:[#allocation14 + $0x21c] sm:$0xf]  ;;  %v4368_v32 = vld [vmem:[#allocation14 + $0x234] sm:$0xf0] }
 0x1e7   : > { %v4014_v30 = vor.u32 %v4364_v22, %v4011_v23  ;;  %v4018_v41 = vor.u32 %v4368_v32, %v4017_v31  ;;  %v4371_v31 = vld [vmem:[#allocation14 + $0x254] sm:$0xf]  ;;  %v4043_v32 = vld [vmem:[#allocation14 + $0x268] sm:$0xf0] }
 0x1e8   : > { %2519 = vmatpush.bf16.msrb.mxu2 %v3790_v24  ;;  %2547 = vmatpush.bf16.msra.mxu0 %v3794_v25  ;;  %v3874_v24 = vor.u32 %v4332_v14, %v3873_v13  ;;  %v4322_v25 = vld [vmem:[#allocation14 + $0xcc] sm:$0xf]  ;;  %v3747_v13 = vld [vmem:[#allocation14 + $0x20] sm:$0xf0]  ;;  %v3753_v14 = vld [vmem:[#allocation14 + $0x10] sm:$0xf]  ;;  %v4046_v37 = vor.u32 %v4371_v31, %v4043_v32 }
 0x1e9   : > { %v3846_v33 = vor.u32 %v4322_v25, %v3843_v26  ;;  %v3750_v22 = vor.u32 %v4298_v12, %v3747_v13  ;;  %v4377_v25 = vld [vmem:[#allocation14 + $0x284] sm:$0xf]  ;;  %v4067_v26 = vld [vmem:[#allocation14 + $0x298] sm:$0xf0] }
 0x1ea   : > { %2535 = vmatpush.bf16.msrb.mxu3 %v3934_v63  ;;  %2563 = vmatpush.bf16.msra.mxu1 %v3938_v47  ;;  %v3850_v63 = vor.u32 %v4326_v28, %v3849_v27  ;;  %v3963_v47 = vld [vmem:[#allocation14 + $0x1d0] sm:$0xf0]  ;;  %v3899_v28 = vld [vmem:[#allocation14 + $0x148] sm:$0xf0] }
 0x1eb   : > { %v4335_v27 = vld [vmem:[#allocation14 + $0x134] sm:$0xf] }
 0x1ec   : > { %2520 = vmatpush.bf16.msrb.mxu2 %v3766_v40  ;;  %2548 = vmatpush.bf16.msra.mxu0 %v3770_v43  ;;  %v4320_v40 = vld [vmem:[#allocation14 + $0xb4] sm:$0xf0]  ;;  %v3993_v43 = vld [vmem:[#allocation14 + $0x1f0] sm:$0xf] }
 0x1ed   : > { %2536 = vmatmul.bf16.vlgmr.msrb.gmra.mxu3 %v5215_v16  ;;  %2564 = vmatmul.bf16.vlgmr.msra.gmra.mxu1 %v5215_v16  ;;  %v3994_v53 = vor.u32 %v4362_v44, %v3993_v43  ;;  %v3851_v43 = vld [vmem:[#allocation14 + $0xe8] sm:$0xf0] }
 0x1ee   : > { %2584 = vmatpush.bf16.msra.mxu3 %v4110_v39  ;;  %2612 = vmatpush.bf16.msrb.mxu1 %v4114_v51  ;;  %v3825_v39 = vld [vmem:[#allocation14 + $0xa0] sm:$0xf]  ;;  %v3801_v51 = vld [vmem:[#allocation14 + $0x70] sm:$0xf] }
 0x1ef   : > { %v3826_v48 = vor.u32 %v4320_v40, %v3825_v39  ;;  %v3802_v60 = vor.u32 %v4314_v52, %v3801_v51  ;;  %v4365_v39 = vld [vmem:[#allocation14 + $0x224] sm:$0xf]  ;;  %v4019_v40 = vld [vmem:[#allocation14 + $0x238] sm:$0xf0] }
 0x1f0   : > { %2521 = vmatpush.bf16.msrb.mxu2 %v3742_v55  ;;  %2549 = vmatpush.bf16.msra.mxu0 %v3746_v58  ;;  %v3969_v55 = vld [vmem:[#allocation14 + $0x1c0] sm:$0xf]  ;;  %v4346_v58 = vld [vmem:[#allocation14 + $0x18c] sm:$0xf]  ;;  %v4022_v44 = vor.u32 %v4365_v39, %v4019_v40  ;;  %v4317_v51 = vld [vmem:[#allocation14 + $0xa4] sm:$0xf] }
 0x1f1   : > { %v3827_v52 = vld [vmem:[#allocation14 + $0xb8] sm:$0xf0] }
 0x1f2   : > { %2585 = vmatpush.bf16.msra.mxu3 %v4086_v54  ;;  %2613 = vmatpush.bf16.msrb.mxu1 %v4090_v3  ;;  %v3966_v54 = vor.u32 %v4352_v46, %v3963_v47  ;;  %v3970_v3 = vor.u32 %v4356_v56, %v3969_v55 }
 0x1f3   : > { %2522 = vmatmul.bf16.vlgmr.msrb.gmra.mxu2 %v5219_v34  ;;  %2550 = vmatmul.bf16.vlgmr.msra.gmra.mxu0 %v5219_v34 }
 0x1f4   : > { %2570 = vmatpush.bf16.msra.mxu2 %v3918_v21  ;;  %2598 = vmatpush.bf16.msrb.mxu0 %v3922_v61  ;;  %v3939_v21 = vld [vmem:[#allocation14 + $0x1a0] sm:$0xf0]  ;;  %v4115_v61 = vld [vmem:[#allocation14 + $0x2f8] sm:$0xf0] }
 0x1f6   : > { %2586 = vmatpush.bf16.msra.mxu3 %v4062_v4  ;;  %2614 = vmatpush.bf16.msrb.mxu1 %v4066_v15  ;;  %v3942_v4 = vor.u32 %v4346_v58, %v3939_v21  ;;  %v4302_v15 = vld [vmem:[#allocation14 + $0x24] sm:$0xf0]  ;;  %v4353_v58 = vld [vmem:[#allocation14 + $0x1c4] sm:$0xf]  ;;  %v3971_v21 = vld [vmem:[#allocation14 + $0x1d8] sm:$0xf0] }
 0x1f7   : > { %v3754_v23 = vor.u32 %v4302_v15, %v3753_v14  ;;  %v3974_v0 = vor.u32 %v4353_v58, %v3971_v21  ;;  %v4299_v15 = vld [vmem:[#allocation14 + $0x14] sm:$0xf] }
 0x1f8   : > { %2571 = vmatpush.bf16.msra.mxu2 %v3894_v7  ;;  %2599 = vmatpush.bf16.msrb.mxu0 %v3898_v10  ;;  %v4118_v7 = vor.u32 %v4389_v59, %v4115_v61  ;;  %v4091_v10 = vld [vmem:[#allocation14 + $0x2c8] sm:$0xf0]  ;;  %v4311_v59 = vld [vmem:[#allocation14 + $0x74] sm:$0xf] }
 0x1fa   : > { %2587 = vmatpush.bf16.msra.mxu3 %v4038_v17  ;;  %2615 = vmatpush.bf16.msrb.mxu1 %v4042_v29  ;;  %v4341_v17 = vld [vmem:[#allocation14 + $0x164] sm:$0xf]  ;;  %v4070_v29 = vor.u32 %v4377_v25, %v4067_v26 }
 0x1fc   : > { %2572 = vmatpush.bf16.msra.mxu2 %v3870_v20  ;;  %2600 = vmatpush.bf16.msrb.mxu0 %v3874_v24  ;;  %v4094_v20 = vor.u32 %v4383_v9, %v4091_v10  ;;  %v3926_v24 = vor.u32 %v4341_v17, %v3923_v18  ;;  %v3779_v9 = vld [vmem:[#allocation14 + $0x58] sm:$0xf0]  ;;  %v3755_v17 = vld [vmem:[#allocation14 + $0x28] sm:$0xf0] }
 0x1fe   : > { %2588 = vmatpush.bf16.msra.mxu3 %v4014_v30  ;;  %2616 = vmatpush.bf16.msrb.mxu1 %v4018_v41  ;;  %v3902_v30 = vor.u32 %v4335_v27, %v3899_v28 }
 0x200   : > { %2573 = vmatpush.bf16.msra.mxu2 %v3846_v33  ;;  %2601 = vmatpush.bf16.msrb.mxu0 %v3850_v63  ;;  %v4329_v33 = vld [vmem:[#allocation14 + $0x104] sm:$0xf]  ;;  %v5233_v63 = vld [vmem:[%s5455_s7] sm:$0xff] }
 0x201   : > { %v3878_v38 = vor.u32 %v4329_v33, %v3875_v35  ;;  %v1109_v41 = vperm.slane %v5233_v63, 1  ;;  %v1108_v56 = vperm.slane %v5233_v63, 0  ;;  %v1111_v14 = vperm.slane %v5233_v63, 3 }
 0x202   : > { %2589 = vmatpush.bf16.msra.mxu3 %v3990_v42  ;;  %2617 = vmatpush.bf16.msrb.mxu1 %v3994_v53  ;;  %v4323_v42 = vld [vmem:[#allocation14 + $0xd4] sm:$0xf]  ;;  %v1110_v27 = vperm.slane %v5233_v63, 2 }
 0x203   : > { %v3854_v47 = vor.u32 %v4323_v42, %v3851_v43  ;;  %v1112_v43 = vperm.slane %v5233_v63, 4 }
 0x204   : > { %2574 = vmatpush.bf16.msra.mxu2 %v3822_v45  ;;  %2602 = vmatpush.bf16.msrb.mxu0 %v3826_v48  ;;  %v4359_v48 = vld [vmem:[#allocation14 + $0x1f4] sm:$0xf] }
 0x205   : > { %v3998_v55 = vor.u32 %v4359_v48, %v3995_v49 }
 0x206   : > { %2590 = vmatpush.bf16.msra.mxu3 %v3966_v54  ;;  %2618 = vmatpush.bf16.msrb.mxu1 %v3970_v3 }
 0x208   : > { %2575 = vmatpush.bf16.msra.mxu2 %v3798_v57  ;;  %2603 = vmatpush.bf16.msrb.mxu0 %v3802_v60  ;;  %v3830_v57 = vor.u32 %v4317_v51, %v3827_v52  ;;  %v3803_v60 = vld [vmem:[#allocation14 + $0x88] sm:$0xf0] }
 0x209   : > { %v3806_v3 = vor.u32 %v4311_v59, %v3803_v60  ;;  %v1114_v59 = vperm.slane %v5233_v63, 6 }
 0x20a   : > { %2591 = vmatpush.bf16.msra.mxu3 %v3942_v4  ;;  %2619 = vmatpush.bf16.msrb.mxu1 %v3946_v19  ;;  %v1749_v36 = vpop.f32.mrf.mxu1  ;;  %v4347_v4 = vld [vmem:[#allocation14 + $0x194] sm:$0xf] }
 0x20c   : > { %2576 = vmatpush.bf16.msra.mxu2 %v3774_v8  ;;  %2604 = vmatpush.bf16.msrb.mxu0 %v3778_v11  ;;  %v4305_v8 = vld [vmem:[#allocation14 + $0x44] sm:$0xf]  ;;  %v3950_v11 = vor.u32 %v4347_v4, %v3947_v5 }
 0x20d   : > { %2592 = vmatmul.bf16.vlgmr.msra.gmra.mxu3 %v5215_v16  ;;  %2620 = vmatmul.bf16.vlgmr.msrb.gmra.mxu1 %v5215_v16  ;;  %v3782_v12 = vor.u32 %v4305_v8, %v3779_v9 }
 0x20e   : > { %2640 = vmatpush.bf16.msrb.mxu3 %v4118_v7 }
 0x210   : > { %2577 = vmatpush.bf16.msra.mxu2 %v3750_v22  ;;  %2605 = vmatpush.bf16.msrb.mxu0 %v3754_v23  ;;  %v1721_v45 = vpop.f32.mrf.mxu3  ;;  %v1735_v46 = vpop.f32.mrf.mxu0  ;;  %v3758_v22 = vor.u32 %v4299_v15, %v3755_v17 }
 0x211   : > { %v1736_v50 = vadd.f32 %v1735_v46, %v1109_v41 }
 0x212   : > { %2641 = vmatpush.bf16.msrb.mxu3 %v4094_v20  ;;  %v1751_v54 = vpop.f32.mrf.mxu1 }
 0x213   : > { %2578 = vmatmul.bf16.vlgmr.msra.gmra.mxu2 %v5219_v34  ;;  %2606 = vmatmul.bf16.vlgmr.msrb.gmra.mxu0 %v5219_v34  ;;  %v5237_v53 = vadd.f32 %v1749_v36, %v1736_v50 }
 0x214   : > { %2626 = vmatpush.bf16.msrb.mxu2 %v3926_v24 }
 0x216   : > { %2642 = vmatpush.bf16.msrb.mxu3 %v4070_v29  ;;  %v1707_v61 = vpop.f32.mrf.mxu2 }
 0x217   : > { %v1708_v62 = vadd.f32 %v1707_v61, %v1108_v56 }
 0x218   : > { %2627 = vmatpush.bf16.msrb.mxu2 %v3902_v30  ;;  %v1723_v1 = vpop.f32.mrf.mxu3  ;;  %v1737_v2 = vpop.f32.mrf.mxu0 }
 0x219   : > { %v5240_v6 = vadd.f32 %v1721_v45, %v1708_v62  ;;  %v1738_v7 = vadd.f32 %v1737_v2, %v1109_v41 }
 0x21a   : > { %2643 = vmatpush.bf16.msrb.mxu3 %v4046_v37  ;;  %v1805_v13 = vpop.f32.mrf.mxu1 }
 0x21b   : > { %v5242_v10 = vadd.f32 %v1751_v54, %v1738_v7 }
 0x21c   : > { %2628 = vmatpush.bf16.msrb.mxu2 %v3878_v38  ;;  %v1113_v38 = vperm.slane %v5233_v63, 5 }
 0x21e   : > { %2644 = vmatpush.bf16.msrb.mxu3 %v4022_v44  ;;  %v1709_v18 = vpop.f32.mrf.mxu2 }
 0x21f   : > { %v1710_v19 = vadd.f32 %v1709_v18, %v1108_v56 }
 0x220   : > { %2629 = vmatpush.bf16.msrb.mxu2 %v3854_v47  ;;  %v1791_v20 = vpop.f32.mrf.mxu0  ;;  %v1777_v25 = vpop.f32.mrf.mxu3 }
 0x221   : > { %v1724_v23 = vadd.f32 %v1723_v1, %v1710_v19  ;;  %v1792_v24 = vadd.f32 %v1791_v20, %v1111_v14 }
 0x222   : > { %2645 = vmatpush.bf16.msrb.mxu3 %v3998_v55  ;;  %v1807_v29 = vpop.f32.mrf.mxu1 }
 0x223   : > { %v5246_v26 = vadd.f32 %v1805_v13, %v1792_v24 }
 0x224   : > { %2630 = vmatpush.bf16.msrb.mxu2 %v3830_v57  ;;  %v5264_v57 = vld [vmem:[#allocation15] sm:$0x3f] }
 0x225   : > { %v1994_v21 = vperm.slane %v5264_v57, 0  ;;  %v1996_v19 = vperm.slane %v5264_v57, 2 }
 0x226   : > { %2646 = vmatpush.bf16.msrb.mxu3 %v3974_v0  ;;  %v1763_v28 = vpop.f32.mrf.mxu2 }
 0x227   : > { %v1764_v30 = vadd.f32 %v1763_v28, %v1110_v27 }
 0x228   : > { %2631 = vmatpush.bf16.msrb.mxu2 %v3806_v3  ;;  %v1793_v31 = vpop.f32.mrf.mxu0  ;;  %v1779_v36 = vpop.f32.mrf.mxu3 }
 0x229   : > { %v1778_v32 = vadd.f32 %v1777_v25, %v1764_v30  ;;  %v1794_v33 = vadd.f32 %v1793_v31, %v1111_v14 }
 0x22a   : > { %2647 = vmatpush.bf16.msrb.mxu3 %v3950_v11  ;;  %v1861_v39 = vpop.f32.mrf.mxu1 }
 0x22b   : > { %v5250_v35 = vadd.f32 %v1807_v29, %v1794_v33  ;;  %v1995_v29 = vperm.slane %v5264_v57, 1 }
 0x22c   : > { %2632 = vmatpush.bf16.msrb.mxu2 %v3782_v12 }
 0x22d   : > { %2648 = vmatmul.bf16.vlgmr.msrb.gmra.mxu3 %v5215_v16 }
 0x22e   : > { %v1765_v37 = vpop.f32.mrf.mxu2 }
 0x22f   : > { %v1766_v16 = vadd.f32 %v1765_v37, %v1110_v27 }
 0x230   : > { %2633 = vmatpush.bf16.msrb.mxu2 %v3758_v22  ;;  %v1847_v41 = vpop.f32.mrf.mxu0 }
 0x231   : > { %v5253_v40 = vadd.f32 %v1779_v36, %v1766_v16  ;;  %v1848_v42 = vadd.f32 %v1847_v41, %v1113_v38 }
 0x232   : > { %v1863_v50 = vpop.f32.mrf.mxu1 }
 0x233   : > { %2634 = vmatmul.bf16.vlgmr.msrb.gmra.mxu2 %v5219_v34  ;;  %v5256_v44 = vadd.f32 %v1861_v39, %v1848_v42  ;;  %v1833_v34 = vpop.f32.mrf.mxu3 }
 0x236   : > { %v1819_v45 = vpop.f32.mrf.mxu2 }
 0x237   : > { %v1820_v46 = vadd.f32 %v1819_v45, %v1112_v43 }
 0x238   : > { %v1849_v48 = vpop.f32.mrf.mxu0 }
 0x239   : > { %v5258_v47 = vadd.f32 %v1833_v34, %v1820_v46  ;;  %v1850_v49 = vadd.f32 %v1849_v48, %v1113_v38 }
 0x23b   : > { %v5260_v51 = vadd.f32 %v1863_v50, %v1850_v49  ;;  %v1835_v55 = vpop.f32.mrf.mxu3 }
 0x23e   : > { %v1821_v52 = vpop.f32.mrf.mxu2 }
 0x23f   : > { %v1822_v54 = vadd.f32 %v1821_v52, %v1112_v43 }
 0x241   : > { %v5262_v56 = vadd.f32 %v1835_v55, %v1822_v54 }
 0x24a   : > { %v2509_v60 = vpop.f32.mrf.mxu1 }
 0x250   : > { %v2495_v58 = vpop.f32.mrf.mxu0  ;;  %v1889_v62 = vpop.f32.mrf.mxu3 }
 0x251   : > { %v2496_v61 = vadd.f32 %v2495_v58, %v1994_v21 }
 0x252   : > { %v2511_v8 = vpop.f32.mrf.mxu1 }
 0x253   : > { %v2510_v2 = vadd.f32 %v2509_v60, %v2496_v61 }
 0x255   : > { %v2654_v5 = vadd.f32 %v2510_v2, %v5240_v6 }
 0x256   : > { %v1875_v0 = vpop.f32.mrf.mxu2 }
 0x257   : > { %v1876_v1 = vadd.f32 %v1875_v0, %v1114_v59  ;;  %v4119_v13 = vmul.f32 -1.442695, %v2654_v5 }
 0x258   : > { %v2497_v4 = vpop.f32.mrf.mxu0  ;;  %v1891_v12 = vpop.f32.mrf.mxu3 }
 0x259   : > { %v1890_v3 = vadd.f32 %v1889_v62, %v1876_v1  ;;  %v2498_v7 = vadd.f32 %v2497_v4, %v1994_v21  ;;  %4549 = vpow2.f32 %v4119_v13 }
 0x25b   : > { %2846 = vst [vmem:[%s5195_s24] sm:$0xff] %v1890_v3  ;;  %v2512_v14 = vadd.f32 %v2511_v8, %v2498_v7  ;;  %v1998_v3 = vperm.slane %v5264_v57, 4 }
 0x25d   : > { %v2656_v15 = vadd.f32 %v2512_v14, %v1724_v23 }
 0x25e   : > { %v1877_v9 = vpop.f32.mrf.mxu2 }
 0x25f   : > { %v1878_v11 = vadd.f32 %v1877_v9, %v1114_v59  ;;  %v4121_v17 = vmul.f32 -1.442695, %v2656_v15  ;;  %v4550_v18 = vpop.eup %4549 }
 0x260   : > { %v5272_v22 = vadd.f32 1.0, %v4550_v18 }
 0x261   : > { %v1892_v63 = vadd.f32 %v1891_v12, %v1878_v11  ;;  %4551 = vpow2.f32 %v4121_v17  ;;  %v1997_v17 = vperm.slane %v5264_v57, 3 }
 0x262   : > { %4553 = vrcp.f32 %v5272_v22  ;;  %v2685_v4 = vand.u32 2147483648, %v5272_v22  ;;  %vm2679_vm1 = vweird.f32 %v5272_v22  ;;  %v2683_v8 = vand.u32 2147483647, %v5272_v22 }
 0x263   : > { %2847 = vst [vmem:[%s5195_s24 + $0x8] sm:$0xff] %v1892_v63 }
 0x264   : > { %vm2684_vm3 = vcmp.eq.f32.partialorder %v2683_v8, 8.507059e+37 }
 0x267   : > { %v4552_v27 = vpop.eup %4551 }
 0x268   : > { %v5276_v23 = vadd.f32 1.0, %v4552_v27  ;;  %v4554_v39 = vpop.eup %4553 }
 0x269   : > { %vm2680_vm0 = vweird.f32 %v4554_v39 }
 0x26a   : > { %v2565_v20 = vpop.f32.mrf.mxu1  ;;  %vm2681_vm2 = vmor %vm2679_vm1, %vm2680_vm0  ;;  %vm2709_vm8 = vweird.f32 %v5276_v23 }
 0x270   : > { %v2551_v6 = vpop.f32.mrf.mxu0  ;;  %v2537_v38 = vpop.f32.mrf.mxu3 }
 0x271   : > { %v2552_v24 = vadd.f32 %v2551_v6, %v1996_v19 }
 0x272   : > { %v2567_v36 = vpop.f32.mrf.mxu1 }
 0x273   : > { %v2566_v25 = vadd.f32 %v2565_v20, %v2552_v24 }
 0x275   : > { %v2734_v28 = vadd.f32 %v2566_v25, %v1778_v32  ;;  %v2675_v32 = vmul.f32 %v4554_v39, %v5272_v22  ;;  %v2715_v22 = vand.u32 2147483648, %v5276_v23 }
 0x276   : > { %v2523_v30 = vpop.f32.mrf.mxu2 }
 0x277   : > { %v4123_v31 = vmul.f32 -1.442695, %v2734_v28  ;;  %v2524_v37 = vadd.f32 %v2523_v30, %v1995_v29  ;;  %v2676_v50 = vsub.f32 1.0, %v2675_v32 }
 0x278   : > { %v2553_v33 = vpop.f32.mrf.mxu0  ;;  %v2539_v55 = vpop.f32.mrf.mxu3 }
 0x279   : > { %4555 = vpow2.f32 %v4123_v31  ;;  %v2554_v16 = vadd.f32 %v2553_v33, %v1996_v19  ;;  %v2538_v42 = vadd.f32 %v2537_v38, %v2524_v37  ;;  %v2677_v21 = vmul.f32 %v4554_v39, %v2676_v50 }
 0x27a   : > { %4557 = vrcp.f32 %v5276_v23 }
 0x27b   : > { %v2568_v41 = vadd.f32 %v2567_v36, %v2554_v16  ;;  %v2655_v49 = vadd.f32 %v2538_v42, %v5237_v53  ;;  %v2678_v0 = vadd.f32 %v4554_v39, %v2677_v21 }
 0x27d   : > { %v2736_v43 = vadd.f32 %v2568_v41, %v5253_v40  ;;  %v4120_v58 = vmul.f32 -1.442695, %v2655_v49  ;;  %v2682_v12 = vsel %vm2681_vm2, %v4554_v39, %v2678_v0  ;;  %v2713_v39 = vand.u32 2147483647, %v5276_v23 }
 0x27e   : > { %v2525_v46 = vpop.f32.mrf.mxu2  ;;  %v2716_v49 = vor.u32 1.1754944e-38, %v2715_v22  ;;  %v4590_v22 = vld [vmem:[#allocation2 + $0x18] sm:$0xff] }
 0x27f   : > { %v4556_v34 = vpop.eup %4555  ;;  %v4125_v45 = vmul.f32 -1.442695, %v2736_v43  ;;  %v2526_v54 = vadd.f32 %v2525_v46, %v1995_v29  ;;  %vm2714_vm11 = vcmp.eq.f32.partialorder %v2713_v39, 8.507059e+37 }
 0x280   : > { %v5281_v48 = vadd.f32 1.0, %v4556_v34  ;;  %v5284_v52 = vpop.eup %4557 }
 0x281   : > { %4559 = vpow2.f32 %v4125_v45  ;;  %v2705_v40 = vmul.f32 %v5284_v52, %v5276_v23  ;;  %v2540_v59 = vadd.f32 %v2539_v55, %v2526_v54  ;;  %vm2710_vm4 = vweird.f32 %v5284_v52 }
 0x282   : > { %4561 = vrcp.f32 %v5281_v48  ;;  %vm2759_vm6 = vweird.f32 %v5281_v48  ;;  %v2765_v28 = vand.u32 2147483648, %v5281_v48  ;;  %v2763_v36 = vand.u32 2147483647, %v5281_v48  ;;  %vm5331_vm9 = vmor %vm2709_vm8, %vm2710_vm4 }
 0x283   : > { %4563 = vpow2.f32 %v4120_v58  ;;  %v2706_v1 = vsub.f32 1.0, %v2705_v40  ;;  %v2657_v2 = vadd.f32 %v2540_v59, %v5242_v10  ;;  %v2686_v10 = vor.u32 1.1754944e-38, %v2685_v4 }
 0x284   : > { %vm2764_vm10 = vcmp.eq.f32.partialorder %v2763_v36, 8.507059e+37  ;;  %v1999_v36 = vperm.slane %v5264_v57, 5 }
 0x285   : > { %v2707_v13 = vmul.f32 %v5284_v52, %v2706_v1  ;;  %v4122_v14 = vmul.f32 -1.442695, %v2657_v2  ;;  %v2687_v20 = vsel %vm2684_vm3, %v2686_v10, %v2682_v12 }
 0x287   : > { %v4560_v60 = vpop.eup %4559  ;;  %v2708_v27 = vadd.f32 %v5284_v52, %v2707_v13 }
 0x288   : > { %v5289_v61 = vpop.eup %4561  ;;  %v5291_v62 = vadd.f32 1.0, %v4560_v60 }
 0x289   : > { %v2755_v53 = vmul.f32 %v5289_v61, %v5281_v48  ;;  %v4564_v15 = vpop.eup %4563  ;;  %vm2760_vm5 = vweird.f32 %v5289_v61  ;;  %v2712_v23 = vsel %vm5331_vm9, %v5284_v52, %v2708_v27 }
 0x28a   : > { %4565 = vrcp.f32 %v5291_v62  ;;  %v2621_v7 = vpop.f32.mrf.mxu1  ;;  %v5315_v31 = vadd.f32 1.0, %v4564_v15  ;;  %vm5318_vm7 = vmor %vm2759_vm6, %vm2760_vm5  ;;  %v2717_v21 = vsel %vm2714_vm11, %v2716_v49, %v2712_v23  ;;  %vm2789_vm13 = vweird.f32 %v5291_v62 }
 0x28b   : > { %v2756_v5 = vsub.f32 1.0, %v2755_v53  ;;  %4567 = vpow2.f32 %v4122_v14  ;;  %v2795_v52 = vand.u32 2147483648, %v5291_v62  ;;  %v2793_v59 = vand.u32 2147483647, %v5291_v62 }
 0x28c   : > { %v2700_v39 = vand.u32 2147483648, %v5315_v31  ;;  %vm2694_vm1 = vweird.f32 %v5315_v31 }
 0x28d   : > { %v2757_v9 = vmul.f32 %v5289_v61, %v2756_v5  ;;  %vm2794_vm15 = vcmp.eq.f32.partialorder %v2793_v59, 8.507059e+37 }
 0x28f   : > { %v2758_v25 = vadd.f32 %v5289_v61, %v2757_v9 }
 0x290   : > { %v2607_v11 = vpop.f32.mrf.mxu0  ;;  %v5304_v18 = vpop.eup %4565 }
 0x291   : > { %v2608_v63 = vadd.f32 %v2607_v11, %v1998_v3  ;;  %v2593_v6 = vpop.f32.mrf.mxu3  ;;  %v2785_v24 = vmul.f32 %v5304_v18, %v5291_v62  ;;  %v2762_v42 = vsel %vm5318_vm7, %v5289_v61, %v2758_v25  ;;  %v4568_v50 = vpop.eup %4567  ;;  %vm2790_vm12 = vweird.f32 %v5304_v18 }
 0x292   : > { %v2623_v34 = vpop.f32.mrf.mxu1  ;;  %v5345_v53 = vadd.f32 1.0, %v4568_v50  ;;  %vm2791_vm14 = vmor %vm2789_vm13, %vm2790_vm12  ;;  %v2796_v11 = vor.u32 1.1754944e-38, %v2795_v52 }
 0x293   : > { %v2622_v19 = vadd.f32 %v2621_v7, %v2608_v63  ;;  %v2786_v33 = vsub.f32 1.0, %v2785_v24  ;;  %v4589_v7 = vld [vmem:[#allocation2 + $0x10] sm:$0xff] }
 0x294   : > { %vm2724_vm8 = vweird.f32 %v5345_v53 }
 0x295   : > { %v2814_v29 = vmul.f32 %v2687_v20, %v2622_v19  ;;  %v2787_v41 = vmul.f32 %v5304_v18, %v2786_v33 }
 0x296   : > { %v2579_v30 = vpop.f32.mrf.mxu2 }
 0x297   : > { %v2580_v37 = vadd.f32 %v2579_v30, %v1997_v17  ;;  %v2818_v16 = vadd.f32 %v2814_v29, %v5258_v47  ;;  %v2766_v47 = vor.u32 1.1754944e-38, %v2765_v28  ;;  %v2788_v40 = vadd.f32 %v5304_v18, %v2787_v41 }
 0x298   : > { %v2609_v32 = vpop.f32.mrf.mxu0  ;;  %v2698_v41 = vand.u32 2147483647, %v5315_v31 }
 0x299   : > { %v2594_v43 = vadd.f32 %v2593_v6, %v2580_v37  ;;  %4569 = vtanh.f32 %v2818_v16  ;;  %v2610_v46 = vadd.f32 %v2609_v32, %v1998_v3  ;;  %v2767_v54 = vsel %vm2764_vm10, %v2766_v47, %v2762_v42 }
 0x29a   : > { %4571 = vrcp.f32 %v5315_v31  ;;  %v2826_v0 = vsub.f32 1.0, %v2767_v54  ;;  %v2834_v8 = vmul.f32 %v4589_v7, %v2767_v54  ;;  %v2792_v62 = vsel %vm2791_vm14, %v5304_v18, %v2788_v40 }
 0x29b   : > { %v2735_v48 = vadd.f32 %v2594_v43, %v5246_v26  ;;  %v2624_v55 = vadd.f32 %v2623_v34, %v2610_v46  ;;  %v2595_v26 = vpop.f32.mrf.mxu3  ;;  %v2797_v14 = vsel %vm2794_vm15, %v2796_v11, %v2792_v62  ;;  %v2701_v46 = vor.u32 1.1754944e-38, %v2700_v39 }
 0x29c   : > { %vm2699_vm3 = vcmp.eq.f32.partialorder %v2698_v41, 8.507059e+37  ;;  %v2730_v40 = vand.u32 2147483648, %v5345_v53 }
 0x29d   : > { %v4124_v58 = vmul.f32 -1.442695, %v2735_v48  ;;  %v2816_v60 = vmul.f32 %v2717_v21, %v2624_v55 }
 0x29e   : > { %v2581_v61 = vpop.f32.mrf.mxu2 }
 0x29f   : > { %4573 = vpow2.f32 %v4124_v58  ;;  %v2582_v1 = vadd.f32 %v2581_v61, %v1997_v17  ;;  %v4570_v2 = vpop.eup %4569  ;;  %v2820_v3 = vadd.f32 %v2816_v60, %v5262_v56  ;;  %v2828_v17 = vsub.f32 1.0, %v2797_v14 }
 0x2a0   : > { %v4572_v4 = vpop.eup %4571  ;;  %v2830_v5 = vmul.f32 %v4570_v2, %v2826_v0  ;;  %v2728_v60 = vand.u32 2147483647, %v5345_v53 }
 0x2a1   : > { %v2596_v9 = vadd.f32 %v2595_v26, %v2582_v1  ;;  %4575 = vtanh.f32 %v2820_v3  ;;  %v2690_v63 = vmul.f32 %v4572_v4, %v5315_v31  ;;  %vm2695_vm0 = vweird.f32 %v4572_v4 }
 0x2a2   : > { %4577 = vrcp.f32 %v5345_v53  ;;  %v5352_v12 = vadd.f32 %v2834_v8, %v2830_v5  ;;  %vm2696_vm2 = vmor %vm2694_vm1, %vm2695_vm0  ;;  %v2731_v5 = vor.u32 1.1754944e-38, %v2730_v40  ;;  %vm2729_vm11 = vcmp.eq.f32.partialorder %v2728_v60, 8.507059e+37 }
 0x2a3   : > { %v2737_v13 = vadd.f32 %v2596_v9, %v5250_v35  ;;  %v2691_v19 = vsub.f32 1.0, %v2690_v63  ;;  %v2836_v35 = vmul.f32 %v4590_v22, %v2797_v14 }
 0x2a4   : > { %2842 = vst [vmem:[#allocation2 + $0x10] sm:$0xff] %v5352_v12 }
 0x2a5   : > { %v4574_v56 = vpop.eup %4573  ;;  %v4126_v10 = vmul.f32 -1.442695, %v2737_v13  ;;  %v2692_v25 = vmul.f32 %v4572_v4, %v2691_v19 }
 0x2a6   : > { %v5357_v15 = vadd.f32 1.0, %v4574_v56 }
 0x2a7   : > { %4579 = vpow2.f32 %v4126_v10  ;;  %v4576_v18 = vpop.eup %4575  ;;  %v2693_v37 = vadd.f32 %v4572_v4, %v2692_v25  ;;  %v4591_v10 = vld [vmem:[#allocation2] sm:$0xff]  ;;  %v4592_v25 = vld [vmem:[#allocation2 + $0x8] sm:$0xff] }
 0x2a8   : > { %4581 = vrcp.f32 %v5357_v15  ;;  %v5360_v20 = vpop.eup %4577  ;;  %v2832_v6 = vmul.f32 %v4576_v18, %v2828_v17  ;;  %v2780_v54 = vand.u32 2147483648, %v5357_v15  ;;  %vm2774_vm6 = vweird.f32 %v5357_v15 }
 0x2a9   : > { %v2720_v27 = vmul.f32 %v5360_v20, %v5345_v53  ;;  %v2697_v45 = vsel %vm2696_vm2, %v4572_v4, %v2693_v37  ;;  %vm2725_vm5 = vweird.f32 %v5360_v20  ;;  %v2778_v58 = vand.u32 2147483647, %v5357_v15 }
 0x2aa   : > { %v5362_v24 = vadd.f32 %v2836_v35, %v2832_v6  ;;  %v2702_v50 = vsel %vm2699_vm3, %v2701_v46, %v2697_v45  ;;  %vm2726_vm9 = vmor %vm2724_vm8, %vm2725_vm5  ;;  %v2781_v1 = vor.u32 1.1754944e-38, %v2780_v54 }
 0x2ab   : > { %v2721_v38 = vsub.f32 1.0, %v2720_v27  ;;  %vm2779_vm10 = vcmp.eq.f32.partialorder %v2778_v58, 8.507059e+37 }
 0x2ac   : > { %2844 = vst [vmem:[#allocation2 + $0x18] sm:$0xff] %v5362_v24 }
 0x2ad   : > { %v4580_v28 = vpop.eup %4579  ;;  %v2722_v47 = vmul.f32 %v5360_v20, %v2721_v38 }
 0x2ae   : > { %v4582_v29 = vpop.eup %4581  ;;  %v5367_v30 = vadd.f32 1.0, %v4580_v28 }
 0x2af   : > { %v2770_v33 = vmul.f32 %v4582_v29, %v5357_v15  ;;  %vm2775_vm4 = vweird.f32 %v4582_v29  ;;  %v2723_v55 = vadd.f32 %v5360_v20, %v2722_v47 }
 0x2b0   : > { %4583 = vrcp.f32 %v5367_v30  ;;  %v2649_v43 = vpop.f32.mrf.mxu3  ;;  %vm5383_vm7 = vmor %vm2774_vm6, %vm2775_vm4  ;;  %v2810_v62 = vand.u32 2147483648, %v5367_v30  ;;  %vm2804_vm13 = vweird.f32 %v5367_v30  ;;  %v2808_v11 = vand.u32 2147483647, %v5367_v30 }
 0x2b1   : > { %v2771_v16 = vsub.f32 1.0, %v2770_v33  ;;  %v2727_v3 = vsel %vm2726_vm9, %v5360_v20, %v2723_v55 }
 0x2b2   : > { %v2732_v53 = vsel %vm2729_vm11, %v2731_v5, %v2727_v3  ;;  %v2811_v18 = vor.u32 1.1754944e-38, %v2810_v62  ;;  %vm2809_vm15 = vcmp.eq.f32.partialorder %v2808_v11, 8.507059e+37 }
 0x2b3   : > { %v2772_v42 = vmul.f32 %v4582_v29, %v2771_v16 }
 0x2b5   : > { %v2773_v48 = vadd.f32 %v4582_v29, %v2772_v42 }
 0x2b6   : > { %v2635_v32 = vpop.f32.mrf.mxu2  ;;  %v4584_v23 = vpop.eup %4583 }
 0x2b7   : > { %v2636_v34 = vadd.f32 %v2635_v32, %v1999_v36  ;;  %v2800_v49 = vmul.f32 %v4584_v23, %v5367_v30  ;;  %v2777_v26 = vsel %vm5383_vm7, %v4582_v29, %v2773_v48  ;;  %vm2805_vm12 = vweird.f32 %v4584_v23 }
 0x2b8   : > { %v2651_v4 = vpop.f32.mrf.mxu3  ;;  %v2782_v7 = vsel %vm2779_vm10, %v2781_v1, %v2777_v26  ;;  %vm2806_vm14 = vmor %vm2804_vm13, %vm2805_vm12 }
 0x2b9   : > { %v2650_v57 = vadd.f32 %v2649_v43, %v2636_v34  ;;  %v2801_v21 = vsub.f32 1.0, %v2800_v49  ;;  %v2827_v13 = vsub.f32 1.0, %v2782_v7  ;;  %v2835_v15 = vmul.f32 %v4591_v10, %v2782_v7 }
 0x2bb   : > { %v2815_v31 = vmul.f32 %v2702_v50, %v2650_v57  ;;  %v2802_v61 = vmul.f32 %v4584_v23, %v2801_v21 }
 0x2bd   : > { %v2819_v59 = vadd.f32 %v2815_v31, %v5256_v44  ;;  %v2803_v8 = vadd.f32 %v4584_v23, %v2802_v61 }
 0x2be   : > { %v2637_v0 = vpop.f32.mrf.mxu2 }
 0x2bf   : > { %4585 = vtanh.f32 %v2819_v59  ;;  %v2638_v2 = vadd.f32 %v2637_v0, %v1999_v36  ;;  %v2807_v17 = vsel %vm2806_vm14, %v4584_v23, %v2803_v8 }
 0x2c0   : > { %v2812_v20 = vsel %vm2809_vm15, %v2811_v18, %v2807_v17 }
 0x2c1   : > { %v2652_v44 = vadd.f32 %v2651_v4, %v2638_v2  ;;  %v2829_v6 = vsub.f32 1.0, %v2812_v20  ;;  %v2837_v27 = vmul.f32 %v4592_v25, %v2812_v20 }
 0x2c3   : > { %v2817_v9 = vmul.f32 %v2732_v53, %v2652_v44 }
 0x2c5   : > { %v4586_v14 = vpop.eup %4585  ;;  %v2821_v63 = vadd.f32 %v2817_v9, %v5260_v51 }
 0x2c6   : > { %v2831_v56 = vmul.f32 %v4586_v14, %v2827_v13 }
 0x2c7   : > { %4587 = vtanh.f32 %v2821_v63 }
 0x2c8   : > { %v2839_v19 = vadd.f32 %v2835_v15, %v2831_v56 }
 0x2ca   : > { %2843 = vst [vmem:[#allocation2] sm:$0xff] %v2839_v19 }
 0x2cd   : > { %v4588_v22 = vpop.eup %4587 }
 0x2ce   : > { %v2833_v35 = vmul.f32 %v4588_v22, %v2829_v6  ;;  %2851 = sbr.rel (%p4127_p3) target bundleno = 727 (0x2d7), region = 100 }
 0x2d0   : > { %v2841_v28 = vadd.f32 %v2837_v27, %v2833_v35 }
 0x2d2   : > { %2845 = vst [vmem:[#allocation2 + $0x8] sm:$0xff] %v2841_v28 }
 0x2d3   : > { %2852 = vst [vmem:[#allocation18] sm:$0xff] %v5352_v12 }
 0x2d4   : > { %2853 = vst [vmem:[#allocation18 + $0x8] sm:$0xff] %v2839_v19 }
 0x2d5   : > { %2854 = vst [vmem:[#allocation18 + $0x10] sm:$0xff] %v5362_v24 }
 0x2d6   : > { %2855 = vst [vmem:[#allocation18 + $0x18] sm:$0xff] %v2841_v28 }
 0x2d7 PF: > { %s4393_s2 = sshll.u32 %s4955_s20, 4  ;;  %s2871_s12 = sshll.u32 %s5195_s24, 4  ;;  %s2872_s12 = int_to_ptr.vmem [resolvable:$true] %s2871_s12 }
 0x2d8   : > { %s2870_s22 = scalar_lea.hbm %s5458_s10, %s4393_s2  ;;  %s2857_s4 = scalar_lea.sflag [#allocation5], %s540_s25 }
 0x2d9   : > { %s2873_s17 = sshll.u32 %s2870_s22, 4  ;;  %s4853_s20 = scalar_lea.hbm %s5458_s10, 128  ;;  %s2874_s17 = int_to_ptr.hbm [resolvable:$true] %s2873_s17 }
 0x2da   : > { %s4847_s19 = sshra.s32 %s2874_s17, 4  ;;  %s4848_s19 = int_to_ptr.hbm [resolvable:$true] %s4847_s19 }
 0x2db   : > { %s4849_s15 = scalar_lea.hbm %s4848_s19, 16  ;;  %p4854_p9 = scmp.lt.s32.totalorder %s4848_s19, %s5458_s10 }
 0x2dc   : > { %p4850_p5 = scmp.ne.s32.totalorder %s4848_s19, %s4849_s15  ;;  %p4855_p10 = scmp.lt.s32.totalorder %s4853_s20, %s4849_s15 }
 0x2de   : > { %p4851_p6 = pnand %p4850_p5, %p5092_p4  ;;  %p4856_p11 = por %p4855_p10, %p4854_p9 }
 0x2e0   : > { %p4852_p7 = pneg %p4851_p6 }
 0x2e2   : > { %p4857_p12 = pnand %p4856_p11, %p4852_p7 }
 0x2e4   : > { %4860 = shalt.err (!%p4857_p12)
}
 0x2e5   : > { %s4981_s25 = smov 128   ;;  %s4982_s6 = smov 8  }
 0x2e6   : > { %4426 = dma.vmem_to_hbm [thread:$0]  (%p5092_p4), %s2872_s12, 256, %s2874_s17, %s2857_s4, %s4981_s25, %s4981_s25, %s4982_s6  }
 0x2e7   : > { %s5493_s14 = sld [smem:[#allocation37_spill]]  ;;  %s4983_s2 = smov [#allocation18]  }
 0x2e8   : > { %s2889_s30 = sshll.u32 %s4983_s2, 4  ;;  %s4984_s29 = smov 256   ;;  %s2890_s30 = int_to_ptr.vmem [resolvable:$true] %s2889_s30 }
 0x2e9   : > { %s4985_s22 = smov 16  }
 0x2ed   : > { %s2891_s26 = sshll.u32 %s5493_s14, 4  ;;  %s2892_s26 = int_to_ptr.hbm [resolvable:$true] %s2891_s26 }
 0x2ee   : > { %4428 = dma.vmem_to_hbm [thread:$0]  (%p5082_p2), %s2890_s30, 512, %s2892_s26, [#allocation19], %s4984_s29, %s4984_s29, %s4985_s22  }
 0x2ef   : > { %4934 = dma.done.wait (%p5082_p2), [#allocation19], 512  }
 0x2f0   : > { %4936 = vsyncadd (%p5082_p2), [#allocation19], 4294966784 }
 0x2f1 PF: > { %s5494_s28 = sld [smem:[#allocation30_spill]] }
 0x2f2   : > { %s5495_s12 = sld [smem:[#allocation27_spill]] }
 0x2f7   : > { %p4479_p4 = scmp.ge.s32.totalorder %s5494_s28, 2 }
 0x2f8   : > { %s2911_s4 = sand.u32 1, %s5495_s12  }
 0x2f9   : > { %p4458_p13 = pnand %p4479_p4, %p5099_p8  ;;  %s2912_s19 = scalar_lea.sflag [#allocation5], %s2911_s4 }
 0x2fb   : > { %p4459_p0 = pneg %p4458_p13 }
 0x2fd   : > { %4938 = dma.done.wait (%p4459_p0), %s2912_s19, 256  }
 0x2fe   : > { %4940 = vsyncadd (%p4459_p0), %s2912_s19, 4294967040  ;;  %s31_s22 = sadd.s32 1, %s5494_s28   ;;  %s5497_s15 = sld [smem:[#allocation28_spill]] }
 0x2ff   : > { %p28_p1 = scmp.ge.s32.totalorder %s31_s22, 10   ;;  %s5498_s19 = sld [smem:[#allocation33_spill]] }
 0x300   : > { %s5499_s20 = sld [smem:[#allocation29_spill]]  ;;  %s5501_s17 = smov %s4947_s18 }
 0x301   : > { %s5500_s21 = sld [smem:[#allocation31_spill]]  ;;  %30 = sbr.rel (!%p28_p1) target bundleno = 15 (0xf), region = 146 }
 0x304   : > { %s5502_s18 = smov %s5497_s15 }
 0x306   :  { %2918 = vsyncpa [#allocation4], 1 }
 0x307   :  { %2920 = vsyncpa [#allocation4 + $0x1], 1 }
 0x308   :  { %2921 = vsyncpa [#allocation7], 1 }
 0x309   :  { %2922 = vsyncpa [#allocation10], 1 }
 0x30a   :  { %2923 = vsyncpa [#allocation13], 1 }
 0x30b   :  { %2924 = vsyncpa [#allocation16], 1 }
 0x30c   :  { %2925 = vsyncpa [#allocation5], 1 }
 0x30d   :  { %2927 = vsyncpa [#allocation5 + $0x1], 1 }
 0x30e   :  { %2928 = vsyncpa [#allocation19], 1 }

</bundles_post_ra>
